<compile_context>
chip_gen: v5e
topology: v5e:2x2
jax: 0.10.0
libtpu: 0.0.40
codegen_flags: <defaults>
</compile_context>

<pallas_src>
import jax
import jax.numpy as jnp
from jax.experimental import pallas as pl
from jax.experimental.pallas import tpu as pltpu


# ------------------------------------------------------------------------------
# Fused NCDHW-native kernel.
# ------------------------------------------------------------------------------
def _down_fused_kernel(x_ref, sel_ref, w_ref, b_ref, o_ref, patch_ref):
    """One grid step = `th` output rows (over the flattened (d, ho) axis) of one n.

    x_ref:     (C, th, 2*W)      input rows; lane q = kh*W + w   (h = 2*ho + kh)
    sel_ref:   (W, 2*Wo)         0/1 deinterleave matrix, sel[w, kw*Wo+wo] = (w == 2*wo+kw)
    w_ref:     (Cout, 4*C)       conv weight, column = (2*kh + kw)*C + c   (compute dtype)
    b_ref:     (Cout, 1)         bias (f32)
    o_ref:     (Cout, th*Wo)     output rows; lane = t*Wo + wo
    patch_ref: (2, C, th, 2*Wo)  VMEM scratch holding the deinterleaved patches
    """
    C, th, two_w = x_ref.shape
    W = two_w // 2
    Wo = sel_ref.shape[1] // 2
    cdtype = w_ref.dtype

    sel = sel_ref[...]                                         # (W, 2*Wo)

    # ---- stage 1: column deinterleave, one big GEMM per kh (covers both kw). ----
    for kh in (0, 1):
        xk = x_ref[:, :, kh * W:(kh + 1) * W]                  # (C, th, W), contiguous lanes
        xk2 = xk.reshape(C * th, W).astype(cdtype)             # free reshape (th % 8 == 0)
        p = jnp.dot(xk2, sel, preferred_element_type=jnp.float32)   # (C*th, 2*Wo)
        patch_ref[kh] = p.astype(cdtype).reshape(C, th, 2 * Wo)

    # ---- stage 2: one channel-contraction GEMM for the whole row tile. ----------
    # rhs rows = (kh, kw, c) -> matches w_ref columns; rhs lanes = (t, wo) -> o_ref lanes.
    # TODO(synk): once Mosaic rank-3 dot_general ((Cout,C) x (C,th,Wo)) or a
    # sublane->lane reshape is confirmed on all target toolchains, the per-row
    # gather below collapses into a single reshape (pure layout plumbing).
    row_chunks = []
    for kh in (0, 1):
        for kw in (0, 1):
            parts = [patch_ref[kh, :, t, kw * Wo:(kw + 1) * Wo] for t in range(th)]
            row_chunks.append(jnp.concatenate(parts, axis=1))  # (C, th*Wo)
    rhs = jnp.concatenate(row_chunks, axis=0)                  # (4*C, th*Wo)

    y = jnp.dot(w_ref[...], rhs, preferred_element_type=jnp.float32)  # (Cout, th*Wo)
    o_ref[...] = (y + b_ref[...]).astype(o_ref.dtype)


def _pick_row_tile(rows, wo, c, w, itemsize, *, max_th=64, target_bytes=4 << 20):
    """Pick th with: th | rows, th % 8 == 0, and ((th*wo) % 128 == 0 or th == rows)."""
    cands = []
    hi = min(rows, max_th)
    for th in range(8, hi + 1, 8):
        if rows % th:
            continue
        if (th * wo) % 128 != 0 and th != rows:
            continue
        cands.append(th)
    if not cands and rows % 8 == 0 and rows <= 256:
        cands.append(rows)                    # full-extent rows: out block == full last dim
    if not cands:
        return None
    def in_bytes(th):
        return c * th * 2 * w * itemsize
    ok = [t for t in cands if in_bytes(t) <= target_bytes]
    return max(ok) if ok else min(cands)


def _down_fused(x, weight, bias, *, th, use_bf16):
    N, C, D, H, W = x.shape
    Cout = weight.shape[0]
    Ho, Wo = H // 2, W // 2
    R = D * Ho
    out_dtype = x.dtype

    cdtype = jnp.bfloat16 if use_bf16 else jnp.float32
    x_in = x.astype(jnp.bfloat16) if use_bf16 else x
    x_in = x_in.reshape(N, C, R, 2 * W)                        # metadata-only view

    # Host-side (tiny, O(C^2)) parameter prep in the compute dtype.
    w4 = jnp.transpose(weight[:, :, 0, :, :], (0, 2, 3, 1))    # (Cout, kh, kw, Cin)
    w_flat = w4.reshape(Cout, 4 * C).astype(cdtype)            # column = (2*kh+kw)*C + c
    b2 = bias.reshape(Cout, 1).astype(jnp.float32)

    # 0/1 column-deinterleave matrix: sel[w, kw*Wo + wo] = (w == 2*wo + kw).
    w_idx = jnp.arange(W, dtype=jnp.int32)[:, None]
    col = jnp.arange(2 * Wo, dtype=jnp.int32)[None, :]
    sel = (w_idx == 2 * (col % Wo) + col // Wo).astype(cdtype)

    grid = (N, R // th)

    # VMEM budget: double-buffered activation blocks + constants + scratch + working set.
    in_itm = x_in.dtype.itemsize
    osz = out_dtype.itemsize
    csz = 2 if use_bf16 else 4
    in_blk = C * th * 2 * W * in_itm
    out_blk = Cout * th * Wo * osz
    const_blk = (W * 2 * Wo + Cout * 4 * C) * csz + Cout * 4
    scratch_blk = 2 * C * th * 2 * Wo * csz
    work_blk = 4 * C * th * Wo * csz + Cout * th * Wo * 4 + C * th * 2 * W * 4
    need = 2 * (in_blk + out_blk + const_blk) + scratch_blk + work_blk + (4 << 20)
    vmem_limit = int(min(max(need, 16 << 20), 56 << 20))       # headroom on v7x (64 MiB/TC)
    # TODO(synk): mark the three constant operands pipeline_mode=pl.Buffered(1)
    # (single-buffered) once confirmed on all target toolchains to reclaim a bit more
    # VMEM on v7x.

    flops = 2 * N * R * Wo * Cout * 4 * C             # conv channel contraction
    flops += 8 * N * R * C * W * Wo                   # column-deinterleave GEMMs (both kw)
    bytes_accessed = (x_in.size * in_itm + N * Cout * R * Wo * osz
                      + (W * 2 * Wo + Cout * 4 * C) * csz + Cout * 4)
    cost = pl.CostEstimate(flops=int(flops), transcendentals=0,
                           bytes_accessed=int(bytes_accessed))

    out = pl.pallas_call(
        _down_fused_kernel,
        out_shape=jax.ShapeDtypeStruct((N, Cout, R * Wo), out_dtype),
        grid=grid,
        in_specs=[
            pl.BlockSpec((None, C, th, 2 * W), lambda n, j: (n, 0, j, 0)),
            pl.BlockSpec((W, 2 * Wo), lambda n, j: (0, 0)),
            pl.BlockSpec((Cout, 4 * C), lambda n, j: (0, 0)),
            pl.BlockSpec((Cout, 1), lambda n, j: (0, 0)),
        ],
        out_specs=pl.BlockSpec((None, Cout, th * Wo), lambda n, j: (n, 0, j)),
        scratch_shapes=[pltpu.VMEM((2, C, th, 2 * Wo), cdtype)],
        compiler_params=pltpu.CompilerParams(
            dimension_semantics=("parallel", "parallel"),
            vmem_limit_bytes=vmem_limit),
        cost_estimate=cost,
    )(x_in, sel, w_flat, b2)

    return out.reshape(N, Cout, D, Ho, Wo)


# ------------------------------------------------------------------------------
# Portability path (explicitly shape-dispatched, never exception-gated):
# im2col on the host + row-tiled Pallas GEMM.
# ------------------------------------------------------------------------------
def _down_gemm_kernel(a_ref, w_ref, b_ref, o_ref):
    acc = jnp.dot(a_ref[...], w_ref[...], preferred_element_type=jnp.float32)
    o_ref[...] = (acc + b_ref[...]).astype(o_ref.dtype)


def _down_im2col(x, weight, bias, *, tm=512):
    N, C, D, H, W = x.shape
    Cout = weight.shape[0]
    Ho, Wo = H // 2, W // 2
    x_ndhwc = jnp.transpose(x, (0, 2, 3, 4, 1))
    x_p = x_ndhwc.reshape(N, D, Ho, 2, Wo, 2, C)
    x_p = jnp.transpose(x_p, (0, 1, 2, 4, 3, 5, 6))
    M, K = N * D * Ho * Wo, 4 * C
    patches = x_p.reshape(M, K)
    w_mat = jnp.transpose(weight[:, :, 0, :, :], (2, 3, 1, 0)).reshape(K, Cout)
    b_row = bias.reshape(1, Cout)

    tm = min(tm, M)
    M_pad = pl.cdiv(M, tm) * tm
    if M_pad != M:
        patches = jnp.pad(patches, ((0, M_pad - M), (0, 0)))

    out = pl.pallas_call(
        _down_gemm_kernel,
        out_shape=jax.ShapeDtypeStruct((M_pad, Cout), x.dtype),
        grid=(M_pad // tm,),
        in_specs=[
            pl.BlockSpec((tm, K), lambda i: (i, 0)),
            pl.BlockSpec((K, Cout), lambda i: (0, 0)),
            pl.BlockSpec((1, Cout), lambda i: (0, 0)),
        ],
        out_specs=pl.BlockSpec((tm, Cout), lambda i: (i, 0)),
        compiler_params=pltpu.CompilerParams(
            dimension_semantics=("parallel",)),
    )(patches, w_mat, b_row)
    out = out[:M].reshape(N, D, Ho, Wo, Cout)
    return jnp.transpose(out, (0, 4, 1, 2, 3))


# ------------------------------------------------------------------------------
# Public entry point (no host sync, no try/except in the hot path).
# ------------------------------------------------------------------------------
def down_forward(x, weight, bias, *, use_bf16_matmul=False):
    """Conv3d(c, c, (1,2,2), stride=(1,2,2)) forward (PyTorch `Down.forward`).

    x:      (N, C, D, H, W)
    weight: (Cout, C, 1, 2, 2)  (PyTorch Conv3d layout)
    bias:   (Cout,)
    returns (N, Cout, D, H//2, W//2)
    """
    N, C, D, H, W = x.shape
    Ho, Wo = H // 2, W // 2
    if H % 2 or W % 2:
        # A VALID stride-2 conv ignores the trailing odd row / column.
        x = x[:, :, :, :2 * Ho, :2 * Wo]
        H, W = 2 * Ho, 2 * Wo

    itemsize = 2 if use_bf16_matmul else x.dtype.itemsize
    th = _pick_row_tile(D * Ho, Wo, C, W, itemsize)
    if th is None:
        return _down_im2col(x, weight, bias)
    return _down_fused(x, weight, bias, th=th, use_bf16=use_bf16_matmul)


def _reference_conv3d(x, weight, bias):
    out = jax.lax.conv_general_dilated(
        x, weight,
        window_strides=(1, 2, 2),
        padding="VALID",
        dimension_numbers=("NCDHW", "OIDHW", "NCDHW"),
        precision=jax.lax.Precision.HIGHEST,
    )
    return out + bias.reshape(1, -1, 1, 1, 1)


if __name__ == "__main__":
    key = jax.random.PRNGKey(0)
    k_x, k_w, k_b = jax.random.split(key, 3)

    N, C, D, H, W = 2, 4, 3, 16, 16
    x = jax.random.normal(k_x, (N, C, D, H, W), dtype=jnp.float32)

    fan_in = C * 1 * 2 * 2
    bound = 1.0 / (fan_in ** 0.5)
    weight = jax.random.uniform(k_w, (C, C, 1, 2, 2), minval=-bound, maxval=bound,
                                dtype=jnp.float32)
    bias = jax.random.uniform(k_b, (C,), minval=-bound, maxval=bound,
                              dtype=jnp.float32)

    y_ref = _reference_conv3d(x, weight, bias)

    # f32 path (default; numerics match the reference conv).
    y = jax.block_until_ready(down_forward(x, weight, bias))
    assert y.shape == (N, C, D, H // 2, W // 2), y.shape
    err = float(jnp.abs(y - y_ref).max())
    assert jnp.allclose(y, y_ref, atol=1e-4, rtol=1e-4), err

    # bf16 streaming path (AMP-style: bf16 operands, f32 accumulation).
    y_bf = jax.block_until_ready(down_forward(x, weight, bias, use_bf16_matmul=True))
    err_bf = float(jnp.abs(y_bf - y_ref).max())
    assert jnp.allclose(y_bf, y_ref, atol=5e-2, rtol=5e-2), err_bf

    print("KERNEL_OK")
</pallas_src>

<mosaic_0001>
module attributes {stable_mosaic.version = 11 : i64} {
  func.func @_down_fused_kernel(%arg0: i32, %arg1: i32, %arg2: memref<1x4x24x32xf32, #tpu.memory_space<vmem>>, %arg3: memref<16x16xf32, #tpu.memory_space<vmem>>, %arg4: memref<4x16xf32, #tpu.memory_space<vmem>>, %arg5: memref<4x1xf32, #tpu.memory_space<vmem>>, %arg6: memref<1x4x192xf32, #tpu.memory_space<vmem>>, %arg7: memref<2x4x24x16xf32, #tpu.memory_space<vmem>>) attributes {dimension_semantics = [#tpu.dimension_semantics<parallel>, #tpu.dimension_semantics<parallel>], iteration_bounds = array<i64: 2, 1>, scalar_prefetch = 0 : i64, scratch_operands = 1 : i64, tpu.core_type = #tpu.core_type<tc>, window_params = [{transform_indices = @transform_0, window_bounds = array<i64: 1, 4, 24, 32>}, {pipeline_mode = #tpu.pipeline_mode<synchronous>, transform_indices = @transform_1, window_bounds = array<i64: 16, 16>}, {pipeline_mode = #tpu.pipeline_mode<synchronous>, transform_indices = @transform_2, window_bounds = array<i64: 4, 16>}, {pipeline_mode = #tpu.pipeline_mode<synchronous>, transform_indices = @transform_3, window_bounds = array<i64: 4, 1>}, {transform_indices = @transform_4, window_bounds = array<i64: 1, 4, 192>}]} {
    %c0 = arith.constant 0 : index
    %c0_0 = arith.constant 0 : index
    %0 = vector.load %arg3[%c0, %c0_0] : memref<16x16xf32, #tpu.memory_space<vmem>>, vector<16x16xf32>
    %c0_1 = arith.constant 0 : index
    %c0_2 = arith.constant 0 : index
    %c0_3 = arith.constant 0 : index
    %c0_4 = arith.constant 0 : index
    %1 = vector.load %arg2[%c0_1, %c0_2, %c0_3, %c0_4] : memref<1x4x24x32xf32, #tpu.memory_space<vmem>>, vector<1x4x24x16xf32>
    %2 = vector.shape_cast %1 : vector<1x4x24x16xf32> to vector<4x24x16xf32>
    %3 = vector.shape_cast %2 : vector<4x24x16xf32> to vector<96x16xf32>
    %cst = arith.constant dense<0.000000e+00> : vector<96x16xf32>
    %4 = tpu.matmul %3, %0, %cst {dimension_numbers = #tpu.dot_dimension_numbers<[1], [0], [0], [1], [0, 0, 1, 1], [], []>} : vector<96x16xf32>, vector<16x16xf32>, vector<96x16xf32> -> vector<96x16xf32>
    %5 = vector.shape_cast %4 : vector<96x16xf32> to vector<4x24x16xf32>
    %c0_5 = arith.constant 0 : index
    %c0_6 = arith.constant 0 : index
    %c0_7 = arith.constant 0 : index
    %c0_8 = arith.constant 0 : index
    %6 = vector.load %arg7[%c0_5, %c0_6, %c0_7, %c0_8] : memref<2x4x24x16xf32, #tpu.memory_space<vmem>>, vector<1x4x24x16xf32>
    %7 = vector.shape_cast %6 : vector<1x4x24x16xf32> to vector<4x24x16xf32>
    %8 = vector.shape_cast %5 : vector<4x24x16xf32> to vector<1x4x24x16xf32>
    tpu.vector_store %arg7[%c0_5, %c0_6, %c0_7, %c0_8], %8 {strides = array<i32>} : memref<2x4x24x16xf32, #tpu.memory_space<vmem>>, vector<1x4x24x16xf32>,
    %c0_9 = arith.constant 0 : index
    %c0_10 = arith.constant 0 : index
    %c0_11 = arith.constant 0 : index
    %c16 = arith.constant 16 : index
    %9 = vector.load %arg2[%c0_9, %c0_10, %c0_11, %c16] : memref<1x4x24x32xf32, #tpu.memory_space<vmem>>, vector<1x4x24x16xf32>
    %10 = vector.shape_cast %9 : vector<1x4x24x16xf32> to vector<4x24x16xf32>
    %11 = vector.shape_cast %10 : vector<4x24x16xf32> to vector<96x16xf32>
    %cst_12 = arith.constant dense<0.000000e+00> : vector<96x16xf32>
    %12 = tpu.matmul %11, %0, %cst_12 {dimension_numbers = #tpu.dot_dimension_numbers<[1], [0], [0], [1], [0, 0, 1, 1], [], []>} : vector<96x16xf32>, vector<16x16xf32>, vector<96x16xf32> -> vector<96x16xf32>
    %13 = vector.shape_cast %12 : vector<96x16xf32> to vector<4x24x16xf32>
    %c1 = arith.constant 1 : index
    %c0_13 = arith.constant 0 : index
    %c0_14 = arith.constant 0 : index
    %c0_15 = arith.constant 0 : index
    %14 = vector.load %arg7[%c1, %c0_13, %c0_14, %c0_15] : memref<2x4x24x16xf32, #tpu.memory_space<vmem>>, vector<1x4x24x16xf32>
    %15 = vector.shape_cast %14 : vector<1x4x24x16xf32> to vector<4x24x16xf32>
    %16 = vector.shape_cast %13 : vector<4x24x16xf32> to vector<1x4x24x16xf32>
    tpu.vector_store %arg7[%c1, %c0_13, %c0_14, %c0_15], %16 {strides = array<i32>} : memref<2x4x24x16xf32, #tpu.memory_space<vmem>>, vector<1x4x24x16xf32>,
    %c0_16 = arith.constant 0 : index
    %c0_17 = arith.constant 0 : index
    %c0_18 = arith.constant 0 : index
    %c0_19 = arith.constant 0 : index
    %17 = vector.load %arg7[%c0_16, %c0_17, %c0_18, %c0_19] : memref<2x4x24x16xf32, #tpu.memory_space<vmem>>, vector<1x4x1x8xf32>
    %18 = vector.shape_cast %17 : vector<1x4x1x8xf32> to vector<4x8xf32>
    %c0_20 = arith.constant 0 : index
    %c0_21 = arith.constant 0 : index
    %c1_22 = arith.constant 1 : index
    %c0_23 = arith.constant 0 : index
    %19 = vector.load %arg7[%c0_20, %c0_21, %c1_22, %c0_23] : memref<2x4x24x16xf32, #tpu.memory_space<vmem>>, vector<1x4x1x8xf32>
    %20 = vector.shape_cast %19 : vector<1x4x1x8xf32> to vector<4x8xf32>
    %c0_24 = arith.constant 0 : index
    %c0_25 = arith.constant 0 : index
    %c2 = arith.constant 2 : index
    %c0_26 = arith.constant 0 : index
    %21 = vector.load %arg7[%c0_24, %c0_25, %c2, %c0_26] : memref<2x4x24x16xf32, #tpu.memory_space<vmem>>, vector<1x4x1x8xf32>
    %22 = vector.shape_cast %21 : vector<1x4x1x8xf32> to vector<4x8xf32>
    %c0_27 = arith.constant 0 : index
    %c0_28 = arith.constant 0 : index
    %c3 = arith.constant 3 : index
    %c0_29 = arith.constant 0 : index
    %23 = vector.load %arg7[%c0_27, %c0_28, %c3, %c0_29] : memref<2x4x24x16xf32, #tpu.memory_space<vmem>>, vector<1x4x1x8xf32>
    %24 = vector.shape_cast %23 : vector<1x4x1x8xf32> to vector<4x8xf32>
    %c0_30 = arith.constant 0 : index
    %c0_31 = arith.constant 0 : index
    %c4 = arith.constant 4 : index
    %c0_32 = arith.constant 0 : index
    %25 = vector.load %arg7[%c0_30, %c0_31, %c4, %c0_32] : memref<2x4x24x16xf32, #tpu.memory_space<vmem>>, vector<1x4x1x8xf32>
    %26 = vector.shape_cast %25 : vector<1x4x1x8xf32> to vector<4x8xf32>
    %c0_33 = arith.constant 0 : index
    %c0_34 = arith.constant 0 : index
    %c5 = arith.constant 5 : index
    %c0_35 = arith.constant 0 : index
    %27 = vector.load %arg7[%c0_33, %c0_34, %c5, %c0_35] : memref<2x4x24x16xf32, #tpu.memory_space<vmem>>, vector<1x4x1x8xf32>
    %28 = vector.shape_cast %27 : vector<1x4x1x8xf32> to vector<4x8xf32>
    %c0_36 = arith.constant 0 : index
    %c0_37 = arith.constant 0 : index
    %c6 = arith.constant 6 : index
    %c0_38 = arith.constant 0 : index
    %29 = vector.load %arg7[%c0_36, %c0_37, %c6, %c0_38] : memref<2x4x24x16xf32, #tpu.memory_space<vmem>>, vector<1x4x1x8xf32>
    %30 = vector.shape_cast %29 : vector<1x4x1x8xf32> to vector<4x8xf32>
    %c0_39 = arith.constant 0 : index
    %c0_40 = arith.constant 0 : index
    %c7 = arith.constant 7 : index
    %c0_41 = arith.constant 0 : index
    %31 = vector.load %arg7[%c0_39, %c0_40, %c7, %c0_41] : memref<2x4x24x16xf32, #tpu.memory_space<vmem>>, vector<1x4x1x8xf32>
    %32 = vector.shape_cast %31 : vector<1x4x1x8xf32> to vector<4x8xf32>
    %c0_42 = arith.constant 0 : index
    %c0_43 = arith.constant 0 : index
    %c8 = arith.constant 8 : index
    %c0_44 = arith.constant 0 : index
    %33 = vector.load %arg7[%c0_42, %c0_43, %c8, %c0_44] : memref<2x4x24x16xf32, #tpu.memory_space<vmem>>, vector<1x4x1x8xf32>
    %34 = vector.shape_cast %33 : vector<1x4x1x8xf32> to vector<4x8xf32>
    %c0_45 = arith.constant 0 : index
    %c0_46 = arith.constant 0 : index
    %c9 = arith.constant 9 : index
    %c0_47 = arith.constant 0 : index
    %35 = vector.load %arg7[%c0_45, %c0_46, %c9, %c0_47] : memref<2x4x24x16xf32, #tpu.memory_space<vmem>>, vector<1x4x1x8xf32>
    %36 = vector.shape_cast %35 : vector<1x4x1x8xf32> to vector<4x8xf32>
    %c0_48 = arith.constant 0 : index
    %c0_49 = arith.constant 0 : index
    %c10 = arith.constant 10 : index
    %c0_50 = arith.constant 0 : index
    %37 = vector.load %arg7[%c0_48, %c0_49, %c10, %c0_50] : memref<2x4x24x16xf32, #tpu.memory_space<vmem>>, vector<1x4x1x8xf32>
    %38 = vector.shape_cast %37 : vector<1x4x1x8xf32> to vector<4x8xf32>
    %c0_51 = arith.constant 0 : index
    %c0_52 = arith.constant 0 : index
    %c11 = arith.constant 11 : index
    %c0_53 = arith.constant 0 : index
    %39 = vector.load %arg7[%c0_51, %c0_52, %c11, %c0_53] : memref<2x4x24x16xf32, #tpu.memory_space<vmem>>, vector<1x4x1x8xf32>
    %40 = vector.shape_cast %39 : vector<1x4x1x8xf32> to vector<4x8xf32>
    %c0_54 = arith.constant 0 : index
    %c0_55 = arith.constant 0 : index
    %c12 = arith.constant 12 : index
    %c0_56 = arith.constant 0 : index
    %41 = vector.load %arg7[%c0_54, %c0_55, %c12, %c0_56] : memref<2x4x24x16xf32, #tpu.memory_space<vmem>>, vector<1x4x1x8xf32>
    %42 = vector.shape_cast %41 : vector<1x4x1x8xf32> to vector<4x8xf32>
    %c0_57 = arith.constant 0 : index
    %c0_58 = arith.constant 0 : index
    %c13 = arith.constant 13 : index
    %c0_59 = arith.constant 0 : index
    %43 = vector.load %arg7[%c0_57, %c0_58, %c13, %c0_59] : memref<2x4x24x16xf32, #tpu.memory_space<vmem>>, vector<1x4x1x8xf32>
    %44 = vector.shape_cast %43 : vector<1x4x1x8xf32> to vector<4x8xf32>
    %c0_60 = arith.constant 0 : index
    %c0_61 = arith.constant 0 : index
    %c14 = arith.constant 14 : index
    %c0_62 = arith.constant 0 : index
    %45 = vector.load %arg7[%c0_60, %c0_61, %c14, %c0_62] : memref<2x4x24x16xf32, #tpu.memory_space<vmem>>, vector<1x4x1x8xf32>
    %46 = vector.shape_cast %45 : vector<1x4x1x8xf32> to vector<4x8xf32>
    %c0_63 = arith.constant 0 : index
    %c0_64 = arith.constant 0 : index
    %c15 = arith.constant 15 : index
    %c0_65 = arith.constant 0 : index
    %47 = vector.load %arg7[%c0_63, %c0_64, %c15, %c0_65] : memref<2x4x24x16xf32, #tpu.memory_space<vmem>>, vector<1x4x1x8xf32>
    %48 = vector.shape_cast %47 : vector<1x4x1x8xf32> to vector<4x8xf32>
    %c0_66 = arith.constant 0 : index
    %c0_67 = arith.constant 0 : index
    %c16_68 = arith.constant 16 : index
    %c0_69 = arith.constant 0 : index
    %49 = vector.load %arg7[%c0_66, %c0_67, %c16_68, %c0_69] : memref<2x4x24x16xf32, #tpu.memory_space<vmem>>, vector<1x4x1x8xf32>
    %50 = vector.shape_cast %49 : vector<1x4x1x8xf32> to vector<4x8xf32>
    %c0_70 = arith.constant 0 : index
    %c0_71 = arith.constant 0 : index
    %c17 = arith.constant 17 : index
    %c0_72 = arith.constant 0 : index
    %51 = vector.load %arg7[%c0_70, %c0_71, %c17, %c0_72] : memref<2x4x24x16xf32, #tpu.memory_space<vmem>>, vector<1x4x1x8xf32>
    %52 = vector.shape_cast %51 : vector<1x4x1x8xf32> to vector<4x8xf32>
    %c0_73 = arith.constant 0 : index
    %c0_74 = arith.constant 0 : index
    %c18 = arith.constant 18 : index
    %c0_75 = arith.constant 0 : index
    %53 = vector.load %arg7[%c0_73, %c0_74, %c18, %c0_75] : memref<2x4x24x16xf32, #tpu.memory_space<vmem>>, vector<1x4x1x8xf32>
    %54 = vector.shape_cast %53 : vector<1x4x1x8xf32> to vector<4x8xf32>
    %c0_76 = arith.constant 0 : index
    %c0_77 = arith.constant 0 : index
    %c19 = arith.constant 19 : index
    %c0_78 = arith.constant 0 : index
    %55 = vector.load %arg7[%c0_76, %c0_77, %c19, %c0_78] : memref<2x4x24x16xf32, #tpu.memory_space<vmem>>, vector<1x4x1x8xf32>
    %56 = vector.shape_cast %55 : vector<1x4x1x8xf32> to vector<4x8xf32>
    %c0_79 = arith.constant 0 : index
    %c0_80 = arith.constant 0 : index
    %c20 = arith.constant 20 : index
    %c0_81 = arith.constant 0 : index
    %57 = vector.load %arg7[%c0_79, %c0_80, %c20, %c0_81] : memref<2x4x24x16xf32, #tpu.memory_space<vmem>>, vector<1x4x1x8xf32>
    %58 = vector.shape_cast %57 : vector<1x4x1x8xf32> to vector<4x8xf32>
    %c0_82 = arith.constant 0 : index
    %c0_83 = arith.constant 0 : index
    %c21 = arith.constant 21 : index
    %c0_84 = arith.constant 0 : index
    %59 = vector.load %arg7[%c0_82, %c0_83, %c21, %c0_84] : memref<2x4x24x16xf32, #tpu.memory_space<vmem>>, vector<1x4x1x8xf32>
    %60 = vector.shape_cast %59 : vector<1x4x1x8xf32> to vector<4x8xf32>
    %c0_85 = arith.constant 0 : index
    %c0_86 = arith.constant 0 : index
    %c22 = arith.constant 22 : index
    %c0_87 = arith.constant 0 : index
    %61 = vector.load %arg7[%c0_85, %c0_86, %c22, %c0_87] : memref<2x4x24x16xf32, #tpu.memory_space<vmem>>, vector<1x4x1x8xf32>
    %62 = vector.shape_cast %61 : vector<1x4x1x8xf32> to vector<4x8xf32>
    %c0_88 = arith.constant 0 : index
    %c0_89 = arith.constant 0 : index
    %c23 = arith.constant 23 : index
    %c0_90 = arith.constant 0 : index
    %63 = vector.load %arg7[%c0_88, %c0_89, %c23, %c0_90] : memref<2x4x24x16xf32, #tpu.memory_space<vmem>>, vector<1x4x1x8xf32>
    %64 = vector.shape_cast %63 : vector<1x4x1x8xf32> to vector<4x8xf32>
    %65 = tpu.concatenate %18, %20, %22, %24, %26, %28, %30, %32, %34, %36, %38, %40, %42, %44, %46, %48 in 1 : vector<4x8xf32>, vector<4x8xf32>, vector<4x8xf32>, vector<4x8xf32>, vector<4x8xf32>, vector<4x8xf32>, vector<4x8xf32>, vector<4x8xf32>, vector<4x8xf32>, vector<4x8xf32>, vector<4x8xf32>, vector<4x8xf32>, vector<4x8xf32>, vector<4x8xf32>, vector<4x8xf32>, vector<4x8xf32> -> vector<4x128xf32>
    %66 = tpu.concatenate %50, %52, %54, %56, %58, %60, %62, %64 in 1 : vector<4x8xf32>, vector<4x8xf32>, vector<4x8xf32>, vector<4x8xf32>, vector<4x8xf32>, vector<4x8xf32>, vector<4x8xf32>, vector<4x8xf32> -> vector<4x64xf32>
    %67 = tpu.concatenate %65, %66 in 1 : vector<4x128xf32>, vector<4x64xf32> -> vector<4x192xf32>
    %c0_91 = arith.constant 0 : index
    %c0_92 = arith.constant 0 : index
    %c0_93 = arith.constant 0 : index
    %c8_94 = arith.constant 8 : index
    %68 = vector.load %arg7[%c0_91, %c0_92, %c0_93, %c8_94] : memref<2x4x24x16xf32, #tpu.memory_space<vmem>>, vector<1x4x1x8xf32>
    %69 = vector.shape_cast %68 : vector<1x4x1x8xf32> to vector<4x8xf32>
    %c0_95 = arith.constant 0 : index
    %c0_96 = arith.constant 0 : index
    %c1_97 = arith.constant 1 : index
    %c8_98 = arith.constant 8 : index
    %70 = vector.load %arg7[%c0_95, %c0_96, %c1_97, %c8_98] : memref<2x4x24x16xf32, #tpu.memory_space<vmem>>, vector<1x4x1x8xf32>
    %71 = vector.shape_cast %70 : vector<1x4x1x8xf32> to vector<4x8xf32>
    %c0_99 = arith.constant 0 : index
    %c0_100 = arith.constant 0 : index
    %c2_101 = arith.constant 2 : index
    %c8_102 = arith.constant 8 : index
    %72 = vector.load %arg7[%c0_99, %c0_100, %c2_101, %c8_102] : memref<2x4x24x16xf32, #tpu.memory_space<vmem>>, vector<1x4x1x8xf32>
    %73 = vector.shape_cast %72 : vector<1x4x1x8xf32> to vector<4x8xf32>
    %c0_103 = arith.constant 0 : index
    %c0_104 = arith.constant 0 : index
    %c3_105 = arith.constant 3 : index
    %c8_106 = arith.constant 8 : index
    %74 = vector.load %arg7[%c0_103, %c0_104, %c3_105, %c8_106] : memref<2x4x24x16xf32, #tpu.memory_space<vmem>>, vector<1x4x1x8xf32>
    %75 = vector.shape_cast %74 : vector<1x4x1x8xf32> to vector<4x8xf32>
    %c0_107 = arith.constant 0 : index
    %c0_108 = arith.constant 0 : index
    %c4_109 = arith.constant 4 : index
    %c8_110 = arith.constant 8 : index
    %76 = vector.load %arg7[%c0_107, %c0_108, %c4_109, %c8_110] : memref<2x4x24x16xf32, #tpu.memory_space<vmem>>, vector<1x4x1x8xf32>
    %77 = vector.shape_cast %76 : vector<1x4x1x8xf32> to vector<4x8xf32>
    %c0_111 = arith.constant 0 : index
    %c0_112 = arith.constant 0 : index
    %c5_113 = arith.constant 5 : index
    %c8_114 = arith.constant 8 : index
    %78 = vector.load %arg7[%c0_111, %c0_112, %c5_113, %c8_114] : memref<2x4x24x16xf32, #tpu.memory_space<vmem>>, vector<1x4x1x8xf32>
    %79 = vector.shape_cast %78 : vector<1x4x1x8xf32> to vector<4x8xf32>
    %c0_115 = arith.constant 0 : index
    %c0_116 = arith.constant 0 : index
    %c6_117 = arith.constant 6 : index
    %c8_118 = arith.constant 8 : index
    %80 = vector.load %arg7[%c0_115, %c0_116, %c6_117, %c8_118] : memref<2x4x24x16xf32, #tpu.memory_space<vmem>>, vector<1x4x1x8xf32>
    %81 = vector.shape_cast %80 : vector<1x4x1x8xf32> to vector<4x8xf32>
    %c0_119 = arith.constant 0 : index
    %c0_120 = arith.constant 0 : index
    %c7_121 = arith.constant 7 : index
    %c8_122 = arith.constant 8 : index
    %82 = vector.load %arg7[%c0_119, %c0_120, %c7_121, %c8_122] : memref<2x4x24x16xf32, #tpu.memory_space<vmem>>, vector<1x4x1x8xf32>
    %83 = vector.shape_cast %82 : vector<1x4x1x8xf32> to vector<4x8xf32>
    %c0_123 = arith.constant 0 : index
    %c0_124 = arith.constant 0 : index
    %c8_125 = arith.constant 8 : index
    %c8_126 = arith.constant 8 : index
    %84 = vector.load %arg7[%c0_123, %c0_124, %c8_125, %c8_126] : memref<2x4x24x16xf32, #tpu.memory_space<vmem>>, vector<1x4x1x8xf32>
    %85 = vector.shape_cast %84 : vector<1x4x1x8xf32> to vector<4x8xf32>
    %c0_127 = arith.constant 0 : index
    %c0_128 = arith.constant 0 : index
    %c9_129 = arith.constant 9 : index
    %c8_130 = arith.constant 8 : index
    %86 = vector.load %arg7[%c0_127, %c0_128, %c9_129, %c8_130] : memref<2x4x24x16xf32, #tpu.memory_space<vmem>>, vector<1x4x1x8xf32>
    %87 = vector.shape_cast %86 : vector<1x4x1x8xf32> to vector<4x8xf32>
    %c0_131 = arith.constant 0 : index
    %c0_132 = arith.constant 0 : index
    %c10_133 = arith.constant 10 : index
    %c8_134 = arith.constant 8 : index
    %88 = vector.load %arg7[%c0_131, %c0_132, %c10_133, %c8_134] : memref<2x4x24x16xf32, #tpu.memory_space<vmem>>, vector<1x4x1x8xf32>
    %89 = vector.shape_cast %88 : vector<1x4x1x8xf32> to vector<4x8xf32>
    %c0_135 = arith.constant 0 : index
    %c0_136 = arith.constant 0 : index
    %c11_137 = arith.constant 11 : index
    %c8_138 = arith.constant 8 : index
    %90 = vector.load %arg7[%c0_135, %c0_136, %c11_137, %c8_138] : memref<2x4x24x16xf32, #tpu.memory_space<vmem>>, vector<1x4x1x8xf32>
    %91 = vector.shape_cast %90 : vector<1x4x1x8xf32> to vector<4x8xf32>
    %c0_139 = arith.constant 0 : index
    %c0_140 = arith.constant 0 : index
    %c12_141 = arith.constant 12 : index
    %c8_142 = arith.constant 8 : index
    %92 = vector.load %arg7[%c0_139, %c0_140, %c12_141, %c8_142] : memref<2x4x24x16xf32, #tpu.memory_space<vmem>>, vector<1x4x1x8xf32>
    %93 = vector.shape_cast %92 : vector<1x4x1x8xf32> to vector<4x8xf32>
    %c0_143 = arith.constant 0 : index
    %c0_144 = arith.constant 0 : index
    %c13_145 = arith.constant 13 : index
    %c8_146 = arith.constant 8 : index
    %94 = vector.load %arg7[%c0_143, %c0_144, %c13_145, %c8_146] : memref<2x4x24x16xf32, #tpu.memory_space<vmem>>, vector<1x4x1x8xf32>
    %95 = vector.shape_cast %94 : vector<1x4x1x8xf32> to vector<4x8xf32>
    %c0_147 = arith.constant 0 : index
    %c0_148 = arith.constant 0 : index
    %c14_149 = arith.constant 14 : index
    %c8_150 = arith.constant 8 : index
    %96 = vector.load %arg7[%c0_147, %c0_148, %c14_149, %c8_150] : memref<2x4x24x16xf32, #tpu.memory_space<vmem>>, vector<1x4x1x8xf32>
    %97 = vector.shape_cast %96 : vector<1x4x1x8xf32> to vector<4x8xf32>
    %c0_151 = arith.constant 0 : index
    %c0_152 = arith.constant 0 : index
    %c15_153 = arith.constant 15 : index
    %c8_154 = arith.constant 8 : index
    %98 = vector.load %arg7[%c0_151, %c0_152, %c15_153, %c8_154] : memref<2x4x24x16xf32, #tpu.memory_space<vmem>>, vector<1x4x1x8xf32>
    %99 = vector.shape_cast %98 : vector<1x4x1x8xf32> to vector<4x8xf32>
    %c0_155 = arith.constant 0 : index
    %c0_156 = arith.constant 0 : index
    %c16_157 = arith.constant 16 : index
    %c8_158 = arith.constant 8 : index
    %100 = vector.load %arg7[%c0_155, %c0_156, %c16_157, %c8_158] : memref<2x4x24x16xf32, #tpu.memory_space<vmem>>, vector<1x4x1x8xf32>
    %101 = vector.shape_cast %100 : vector<1x4x1x8xf32> to vector<4x8xf32>
    %c0_159 = arith.constant 0 : index
    %c0_160 = arith.constant 0 : index
    %c17_161 = arith.constant 17 : index
    %c8_162 = arith.constant 8 : index
    %102 = vector.load %arg7[%c0_159, %c0_160, %c17_161, %c8_162] : memref<2x4x24x16xf32, #tpu.memory_space<vmem>>, vector<1x4x1x8xf32>
    %103 = vector.shape_cast %102 : vector<1x4x1x8xf32> to vector<4x8xf32>
    %c0_163 = arith.constant 0 : index
    %c0_164 = arith.constant 0 : index
    %c18_165 = arith.constant 18 : index
    %c8_166 = arith.constant 8 : index
    %104 = vector.load %arg7[%c0_163, %c0_164, %c18_165, %c8_166] : memref<2x4x24x16xf32, #tpu.memory_space<vmem>>, vector<1x4x1x8xf32>
    %105 = vector.shape_cast %104 : vector<1x4x1x8xf32> to vector<4x8xf32>
    %c0_167 = arith.constant 0 : index
    %c0_168 = arith.constant 0 : index
    %c19_169 = arith.constant 19 : index
    %c8_170 = arith.constant 8 : index
    %106 = vector.load %arg7[%c0_167, %c0_168, %c19_169, %c8_170] : memref<2x4x24x16xf32, #tpu.memory_space<vmem>>, vector<1x4x1x8xf32>
    %107 = vector.shape_cast %106 : vector<1x4x1x8xf32> to vector<4x8xf32>
    %c0_171 = arith.constant 0 : index
    %c0_172 = arith.constant 0 : index
    %c20_173 = arith.constant 20 : index
    %c8_174 = arith.constant 8 : index
    %108 = vector.load %arg7[%c0_171, %c0_172, %c20_173, %c8_174] : memref<2x4x24x16xf32, #tpu.memory_space<vmem>>, vector<1x4x1x8xf32>
    %109 = vector.shape_cast %108 : vector<1x4x1x8xf32> to vector<4x8xf32>
    %c0_175 = arith.constant 0 : index
    %c0_176 = arith.constant 0 : index
    %c21_177 = arith.constant 21 : index
    %c8_178 = arith.constant 8 : index
    %110 = vector.load %arg7[%c0_175, %c0_176, %c21_177, %c8_178] : memref<2x4x24x16xf32, #tpu.memory_space<vmem>>, vector<1x4x1x8xf32>
    %111 = vector.shape_cast %110 : vector<1x4x1x8xf32> to vector<4x8xf32>
    %c0_179 = arith.constant 0 : index
    %c0_180 = arith.constant 0 : index
    %c22_181 = arith.constant 22 : index
    %c8_182 = arith.constant 8 : index
    %112 = vector.load %arg7[%c0_179, %c0_180, %c22_181, %c8_182] : memref<2x4x24x16xf32, #tpu.memory_space<vmem>>, vector<1x4x1x8xf32>
    %113 = vector.shape_cast %112 : vector<1x4x1x8xf32> to vector<4x8xf32>
    %c0_183 = arith.constant 0 : index
    %c0_184 = arith.constant 0 : index
    %c23_185 = arith.constant 23 : index
    %c8_186 = arith.constant 8 : index
    %114 = vector.load %arg7[%c0_183, %c0_184, %c23_185, %c8_186] : memref<2x4x24x16xf32, #tpu.memory_space<vmem>>, vector<1x4x1x8xf32>
    %115 = vector.shape_cast %114 : vector<1x4x1x8xf32> to vector<4x8xf32>
    %116 = tpu.concatenate %69, %71, %73, %75, %77, %79, %81, %83, %85, %87, %89, %91, %93, %95, %97, %99 in 1 : vector<4x8xf32>, vector<4x8xf32>, vector<4x8xf32>, vector<4x8xf32>, vector<4x8xf32>, vector<4x8xf32>, vector<4x8xf32>, vector<4x8xf32>, vector<4x8xf32>, vector<4x8xf32>, vector<4x8xf32>, vector<4x8xf32>, vector<4x8xf32>, vector<4x8xf32>, vector<4x8xf32>, vector<4x8xf32> -> vector<4x128xf32>
    %117 = tpu.concatenate %101, %103, %105, %107, %109, %111, %113, %115 in 1 : vector<4x8xf32>, vector<4x8xf32>, vector<4x8xf32>, vector<4x8xf32>, vector<4x8xf32>, vector<4x8xf32>, vector<4x8xf32>, vector<4x8xf32> -> vector<4x64xf32>
    %118 = tpu.concatenate %116, %117 in 1 : vector<4x128xf32>, vector<4x64xf32> -> vector<4x192xf32>
    %c1_187 = arith.constant 1 : index
    %c0_188 = arith.constant 0 : index
    %c0_189 = arith.constant 0 : index
    %c0_190 = arith.constant 0 : index
    %119 = vector.load %arg7[%c1_187, %c0_188, %c0_189, %c0_190] : memref<2x4x24x16xf32, #tpu.memory_space<vmem>>, vector<1x4x1x8xf32>
    %120 = vector.shape_cast %119 : vector<1x4x1x8xf32> to vector<4x8xf32>
    %c1_191 = arith.constant 1 : index
    %c0_192 = arith.constant 0 : index
    %c1_193 = arith.constant 1 : index
    %c0_194 = arith.constant 0 : index
    %121 = vector.load %arg7[%c1_191, %c0_192, %c1_193, %c0_194] : memref<2x4x24x16xf32, #tpu.memory_space<vmem>>, vector<1x4x1x8xf32>
    %122 = vector.shape_cast %121 : vector<1x4x1x8xf32> to vector<4x8xf32>
    %c1_195 = arith.constant 1 : index
    %c0_196 = arith.constant 0 : index
    %c2_197 = arith.constant 2 : index
    %c0_198 = arith.constant 0 : index
    %123 = vector.load %arg7[%c1_195, %c0_196, %c2_197, %c0_198] : memref<2x4x24x16xf32, #tpu.memory_space<vmem>>, vector<1x4x1x8xf32>
    %124 = vector.shape_cast %123 : vector<1x4x1x8xf32> to vector<4x8xf32>
    %c1_199 = arith.constant 1 : index
    %c0_200 = arith.constant 0 : index
    %c3_201 = arith.constant 3 : index
    %c0_202 = arith.constant 0 : index
    %125 = vector.load %arg7[%c1_199, %c0_200, %c3_201, %c0_202] : memref<2x4x24x16xf32, #tpu.memory_space<vmem>>, vector<1x4x1x8xf32>
    %126 = vector.shape_cast %125 : vector<1x4x1x8xf32> to vector<4x8xf32>
    %c1_203 = arith.constant 1 : index
    %c0_204 = arith.constant 0 : index
    %c4_205 = arith.constant 4 : index
    %c0_206 = arith.constant 0 : index
    %127 = vector.load %arg7[%c1_203, %c0_204, %c4_205, %c0_206] : memref<2x4x24x16xf32, #tpu.memory_space<vmem>>, vector<1x4x1x8xf32>
    %128 = vector.shape_cast %127 : vector<1x4x1x8xf32> to vector<4x8xf32>
    %c1_207 = arith.constant 1 : index
    %c0_208 = arith.constant 0 : index
    %c5_209 = arith.constant 5 : index
    %c0_210 = arith.constant 0 : index
    %129 = vector.load %arg7[%c1_207, %c0_208, %c5_209, %c0_210] : memref<2x4x24x16xf32, #tpu.memory_space<vmem>>, vector<1x4x1x8xf32>
    %130 = vector.shape_cast %129 : vector<1x4x1x8xf32> to vector<4x8xf32>
    %c1_211 = arith.constant 1 : index
    %c0_212 = arith.constant 0 : index
    %c6_213 = arith.constant 6 : index
    %c0_214 = arith.constant 0 : index
    %131 = vector.load %arg7[%c1_211, %c0_212, %c6_213, %c0_214] : memref<2x4x24x16xf32, #tpu.memory_space<vmem>>, vector<1x4x1x8xf32>
    %132 = vector.shape_cast %131 : vector<1x4x1x8xf32> to vector<4x8xf32>
    %c1_215 = arith.constant 1 : index
    %c0_216 = arith.constant 0 : index
    %c7_217 = arith.constant 7 : index
    %c0_218 = arith.constant 0 : index
    %133 = vector.load %arg7[%c1_215, %c0_216, %c7_217, %c0_218] : memref<2x4x24x16xf32, #tpu.memory_space<vmem>>, vector<1x4x1x8xf32>
    %134 = vector.shape_cast %133 : vector<1x4x1x8xf32> to vector<4x8xf32>
    %c1_219 = arith.constant 1 : index
    %c0_220 = arith.constant 0 : index
    %c8_221 = arith.constant 8 : index
    %c0_222 = arith.constant 0 : index
    %135 = vector.load %arg7[%c1_219, %c0_220, %c8_221, %c0_222] : memref<2x4x24x16xf32, #tpu.memory_space<vmem>>, vector<1x4x1x8xf32>
    %136 = vector.shape_cast %135 : vector<1x4x1x8xf32> to vector<4x8xf32>
    %c1_223 = arith.constant 1 : index
    %c0_224 = arith.constant 0 : index
    %c9_225 = arith.constant 9 : index
    %c0_226 = arith.constant 0 : index
    %137 = vector.load %arg7[%c1_223, %c0_224, %c9_225, %c0_226] : memref<2x4x24x16xf32, #tpu.memory_space<vmem>>, vector<1x4x1x8xf32>
    %138 = vector.shape_cast %137 : vector<1x4x1x8xf32> to vector<4x8xf32>
    %c1_227 = arith.constant 1 : index
    %c0_228 = arith.constant 0 : index
    %c10_229 = arith.constant 10 : index
    %c0_230 = arith.constant 0 : index
    %139 = vector.load %arg7[%c1_227, %c0_228, %c10_229, %c0_230] : memref<2x4x24x16xf32, #tpu.memory_space<vmem>>, vector<1x4x1x8xf32>
    %140 = vector.shape_cast %139 : vector<1x4x1x8xf32> to vector<4x8xf32>
    %c1_231 = arith.constant 1 : index
    %c0_232 = arith.constant 0 : index
    %c11_233 = arith.constant 11 : index
    %c0_234 = arith.constant 0 : index
    %141 = vector.load %arg7[%c1_231, %c0_232, %c11_233, %c0_234] : memref<2x4x24x16xf32, #tpu.memory_space<vmem>>, vector<1x4x1x8xf32>
    %142 = vector.shape_cast %141 : vector<1x4x1x8xf32> to vector<4x8xf32>
    %c1_235 = arith.constant 1 : index
    %c0_236 = arith.constant 0 : index
    %c12_237 = arith.constant 12 : index
    %c0_238 = arith.constant 0 : index
    %143 = vector.load %arg7[%c1_235, %c0_236, %c12_237, %c0_238] : memref<2x4x24x16xf32, #tpu.memory_space<vmem>>, vector<1x4x1x8xf32>
    %144 = vector.shape_cast %143 : vector<1x4x1x8xf32> to vector<4x8xf32>
    %c1_239 = arith.constant 1 : index
    %c0_240 = arith.constant 0 : index
    %c13_241 = arith.constant 13 : index
    %c0_242 = arith.constant 0 : index
    %145 = vector.load %arg7[%c1_239, %c0_240, %c13_241, %c0_242] : memref<2x4x24x16xf32, #tpu.memory_space<vmem>>, vector<1x4x1x8xf32>
    %146 = vector.shape_cast %145 : vector<1x4x1x8xf32> to vector<4x8xf32>
    %c1_243 = arith.constant 1 : index
    %c0_244 = arith.constant 0 : index
    %c14_245 = arith.constant 14 : index
    %c0_246 = arith.constant 0 : index
    %147 = vector.load %arg7[%c1_243, %c0_244, %c14_245, %c0_246] : memref<2x4x24x16xf32, #tpu.memory_space<vmem>>, vector<1x4x1x8xf32>
    %148 = vector.shape_cast %147 : vector<1x4x1x8xf32> to vector<4x8xf32>
    %c1_247 = arith.constant 1 : index
    %c0_248 = arith.constant 0 : index
    %c15_249 = arith.constant 15 : index
    %c0_250 = arith.constant 0 : index
    %149 = vector.load %arg7[%c1_247, %c0_248, %c15_249, %c0_250] : memref<2x4x24x16xf32, #tpu.memory_space<vmem>>, vector<1x4x1x8xf32>
    %150 = vector.shape_cast %149 : vector<1x4x1x8xf32> to vector<4x8xf32>
    %c1_251 = arith.constant 1 : index
    %c0_252 = arith.constant 0 : index
    %c16_253 = arith.constant 16 : index
    %c0_254 = arith.constant 0 : index
    %151 = vector.load %arg7[%c1_251, %c0_252, %c16_253, %c0_254] : memref<2x4x24x16xf32, #tpu.memory_space<vmem>>, vector<1x4x1x8xf32>
    %152 = vector.shape_cast %151 : vector<1x4x1x8xf32> to vector<4x8xf32>
    %c1_255 = arith.constant 1 : index
    %c0_256 = arith.constant 0 : index
    %c17_257 = arith.constant 17 : index
    %c0_258 = arith.constant 0 : index
    %153 = vector.load %arg7[%c1_255, %c0_256, %c17_257, %c0_258] : memref<2x4x24x16xf32, #tpu.memory_space<vmem>>, vector<1x4x1x8xf32>
    %154 = vector.shape_cast %153 : vector<1x4x1x8xf32> to vector<4x8xf32>
    %c1_259 = arith.constant 1 : index
    %c0_260 = arith.constant 0 : index
    %c18_261 = arith.constant 18 : index
    %c0_262 = arith.constant 0 : index
    %155 = vector.load %arg7[%c1_259, %c0_260, %c18_261, %c0_262] : memref<2x4x24x16xf32, #tpu.memory_space<vmem>>, vector<1x4x1x8xf32>
    %156 = vector.shape_cast %155 : vector<1x4x1x8xf32> to vector<4x8xf32>
    %c1_263 = arith.constant 1 : index
    %c0_264 = arith.constant 0 : index
    %c19_265 = arith.constant 19 : index
    %c0_266 = arith.constant 0 : index
    %157 = vector.load %arg7[%c1_263, %c0_264, %c19_265, %c0_266] : memref<2x4x24x16xf32, #tpu.memory_space<vmem>>, vector<1x4x1x8xf32>
    %158 = vector.shape_cast %157 : vector<1x4x1x8xf32> to vector<4x8xf32>
    %c1_267 = arith.constant 1 : index
    %c0_268 = arith.constant 0 : index
    %c20_269 = arith.constant 20 : index
    %c0_270 = arith.constant 0 : index
    %159 = vector.load %arg7[%c1_267, %c0_268, %c20_269, %c0_270] : memref<2x4x24x16xf32, #tpu.memory_space<vmem>>, vector<1x4x1x8xf32>
    %160 = vector.shape_cast %159 : vector<1x4x1x8xf32> to vector<4x8xf32>
    %c1_271 = arith.constant 1 : index
    %c0_272 = arith.constant 0 : index
    %c21_273 = arith.constant 21 : index
    %c0_274 = arith.constant 0 : index
    %161 = vector.load %arg7[%c1_271, %c0_272, %c21_273, %c0_274] : memref<2x4x24x16xf32, #tpu.memory_space<vmem>>, vector<1x4x1x8xf32>
    %162 = vector.shape_cast %161 : vector<1x4x1x8xf32> to vector<4x8xf32>
    %c1_275 = arith.constant 1 : index
    %c0_276 = arith.constant 0 : index
    %c22_277 = arith.constant 22 : index
    %c0_278 = arith.constant 0 : index
    %163 = vector.load %arg7[%c1_275, %c0_276, %c22_277, %c0_278] : memref<2x4x24x16xf32, #tpu.memory_space<vmem>>, vector<1x4x1x8xf32>
    %164 = vector.shape_cast %163 : vector<1x4x1x8xf32> to vector<4x8xf32>
    %c1_279 = arith.constant 1 : index
    %c0_280 = arith.constant 0 : index
    %c23_281 = arith.constant 23 : index
    %c0_282 = arith.constant 0 : index
    %165 = vector.load %arg7[%c1_279, %c0_280, %c23_281, %c0_282] : memref<2x4x24x16xf32, #tpu.memory_space<vmem>>, vector<1x4x1x8xf32>
    %166 = vector.shape_cast %165 : vector<1x4x1x8xf32> to vector<4x8xf32>
    %167 = tpu.concatenate %120, %122, %124, %126, %128, %130, %132, %134, %136, %138, %140, %142, %144, %146, %148, %150 in 1 : vector<4x8xf32>, vector<4x8xf32>, vector<4x8xf32>, vector<4x8xf32>, vector<4x8xf32>, vector<4x8xf32>, vector<4x8xf32>, vector<4x8xf32>, vector<4x8xf32>, vector<4x8xf32>, vector<4x8xf32>, vector<4x8xf32>, vector<4x8xf32>, vector<4x8xf32>, vector<4x8xf32>, vector<4x8xf32> -> vector<4x128xf32>
    %168 = tpu.concatenate %152, %154, %156, %158, %160, %162, %164, %166 in 1 : vector<4x8xf32>, vector<4x8xf32>, vector<4x8xf32>, vector<4x8xf32>, vector<4x8xf32>, vector<4x8xf32>, vector<4x8xf32>, vector<4x8xf32> -> vector<4x64xf32>
    %169 = tpu.concatenate %167, %168 in 1 : vector<4x128xf32>, vector<4x64xf32> -> vector<4x192xf32>
    %c1_283 = arith.constant 1 : index
    %c0_284 = arith.constant 0 : index
    %c0_285 = arith.constant 0 : index
    %c8_286 = arith.constant 8 : index
    %170 = vector.load %arg7[%c1_283, %c0_284, %c0_285, %c8_286] : memref<2x4x24x16xf32, #tpu.memory_space<vmem>>, vector<1x4x1x8xf32>
    %171 = vector.shape_cast %170 : vector<1x4x1x8xf32> to vector<4x8xf32>
    %c1_287 = arith.constant 1 : index
    %c0_288 = arith.constant 0 : index
    %c1_289 = arith.constant 1 : index
    %c8_290 = arith.constant 8 : index
    %172 = vector.load %arg7[%c1_287, %c0_288, %c1_289, %c8_290] : memref<2x4x24x16xf32, #tpu.memory_space<vmem>>, vector<1x4x1x8xf32>
    %173 = vector.shape_cast %172 : vector<1x4x1x8xf32> to vector<4x8xf32>
    %c1_291 = arith.constant 1 : index
    %c0_292 = arith.constant 0 : index
    %c2_293 = arith.constant 2 : index
    %c8_294 = arith.constant 8 : index
    %174 = vector.load %arg7[%c1_291, %c0_292, %c2_293, %c8_294] : memref<2x4x24x16xf32, #tpu.memory_space<vmem>>, vector<1x4x1x8xf32>
    %175 = vector.shape_cast %174 : vector<1x4x1x8xf32> to vector<4x8xf32>
    %c1_295 = arith.constant 1 : index
    %c0_296 = arith.constant 0 : index
    %c3_297 = arith.constant 3 : index
    %c8_298 = arith.constant 8 : index
    %176 = vector.load %arg7[%c1_295, %c0_296, %c3_297, %c8_298] : memref<2x4x24x16xf32, #tpu.memory_space<vmem>>, vector<1x4x1x8xf32>
    %177 = vector.shape_cast %176 : vector<1x4x1x8xf32> to vector<4x8xf32>
    %c1_299 = arith.constant 1 : index
    %c0_300 = arith.constant 0 : index
    %c4_301 = arith.constant 4 : index
    %c8_302 = arith.constant 8 : index
    %178 = vector.load %arg7[%c1_299, %c0_300, %c4_301, %c8_302] : memref<2x4x24x16xf32, #tpu.memory_space<vmem>>, vector<1x4x1x8xf32>
    %179 = vector.shape_cast %178 : vector<1x4x1x8xf32> to vector<4x8xf32>
    %c1_303 = arith.constant 1 : index
    %c0_304 = arith.constant 0 : index
    %c5_305 = arith.constant 5 : index
    %c8_306 = arith.constant 8 : index
    %180 = vector.load %arg7[%c1_303, %c0_304, %c5_305, %c8_306] : memref<2x4x24x16xf32, #tpu.memory_space<vmem>>, vector<1x4x1x8xf32>
    %181 = vector.shape_cast %180 : vector<1x4x1x8xf32> to vector<4x8xf32>
    %c1_307 = arith.constant 1 : index
    %c0_308 = arith.constant 0 : index
    %c6_309 = arith.constant 6 : index
    %c8_310 = arith.constant 8 : index
    %182 = vector.load %arg7[%c1_307, %c0_308, %c6_309, %c8_310] : memref<2x4x24x16xf32, #tpu.memory_space<vmem>>, vector<1x4x1x8xf32>
    %183 = vector.shape_cast %182 : vector<1x4x1x8xf32> to vector<4x8xf32>
    %c1_311 = arith.constant 1 : index
    %c0_312 = arith.constant 0 : index
    %c7_313 = arith.constant 7 : index
    %c8_314 = arith.constant 8 : index
    %184 = vector.load %arg7[%c1_311, %c0_312, %c7_313, %c8_314] : memref<2x4x24x16xf32, #tpu.memory_space<vmem>>, vector<1x4x1x8xf32>
    %185 = vector.shape_cast %184 : vector<1x4x1x8xf32> to vector<4x8xf32>
    %c1_315 = arith.constant 1 : index
    %c0_316 = arith.constant 0 : index
    %c8_317 = arith.constant 8 : index
    %c8_318 = arith.constant 8 : index
    %186 = vector.load %arg7[%c1_315, %c0_316, %c8_317, %c8_318] : memref<2x4x24x16xf32, #tpu.memory_space<vmem>>, vector<1x4x1x8xf32>
    %187 = vector.shape_cast %186 : vector<1x4x1x8xf32> to vector<4x8xf32>
    %c1_319 = arith.constant 1 : index
    %c0_320 = arith.constant 0 : index
    %c9_321 = arith.constant 9 : index
    %c8_322 = arith.constant 8 : index
    %188 = vector.load %arg7[%c1_319, %c0_320, %c9_321, %c8_322] : memref<2x4x24x16xf32, #tpu.memory_space<vmem>>, vector<1x4x1x8xf32>
    %189 = vector.shape_cast %188 : vector<1x4x1x8xf32> to vector<4x8xf32>
    %c1_323 = arith.constant 1 : index
    %c0_324 = arith.constant 0 : index
    %c10_325 = arith.constant 10 : index
    %c8_326 = arith.constant 8 : index
    %190 = vector.load %arg7[%c1_323, %c0_324, %c10_325, %c8_326] : memref<2x4x24x16xf32, #tpu.memory_space<vmem>>, vector<1x4x1x8xf32>
    %191 = vector.shape_cast %190 : vector<1x4x1x8xf32> to vector<4x8xf32>
    %c1_327 = arith.constant 1 : index
    %c0_328 = arith.constant 0 : index
    %c11_329 = arith.constant 11 : index
    %c8_330 = arith.constant 8 : index
    %192 = vector.load %arg7[%c1_327, %c0_328, %c11_329, %c8_330] : memref<2x4x24x16xf32, #tpu.memory_space<vmem>>, vector<1x4x1x8xf32>
    %193 = vector.shape_cast %192 : vector<1x4x1x8xf32> to vector<4x8xf32>
    %c1_331 = arith.constant 1 : index
    %c0_332 = arith.constant 0 : index
    %c12_333 = arith.constant 12 : index
    %c8_334 = arith.constant 8 : index
    %194 = vector.load %arg7[%c1_331, %c0_332, %c12_333, %c8_334] : memref<2x4x24x16xf32, #tpu.memory_space<vmem>>, vector<1x4x1x8xf32>
    %195 = vector.shape_cast %194 : vector<1x4x1x8xf32> to vector<4x8xf32>
    %c1_335 = arith.constant 1 : index
    %c0_336 = arith.constant 0 : index
    %c13_337 = arith.constant 13 : index
    %c8_338 = arith.constant 8 : index
    %196 = vector.load %arg7[%c1_335, %c0_336, %c13_337, %c8_338] : memref<2x4x24x16xf32, #tpu.memory_space<vmem>>, vector<1x4x1x8xf32>
    %197 = vector.shape_cast %196 : vector<1x4x1x8xf32> to vector<4x8xf32>
    %c1_339 = arith.constant 1 : index
    %c0_340 = arith.constant 0 : index
    %c14_341 = arith.constant 14 : index
    %c8_342 = arith.constant 8 : index
    %198 = vector.load %arg7[%c1_339, %c0_340, %c14_341, %c8_342] : memref<2x4x24x16xf32, #tpu.memory_space<vmem>>, vector<1x4x1x8xf32>
    %199 = vector.shape_cast %198 : vector<1x4x1x8xf32> to vector<4x8xf32>
    %c1_343 = arith.constant 1 : index
    %c0_344 = arith.constant 0 : index
    %c15_345 = arith.constant 15 : index
    %c8_346 = arith.constant 8 : index
    %200 = vector.load %arg7[%c1_343, %c0_344, %c15_345, %c8_346] : memref<2x4x24x16xf32, #tpu.memory_space<vmem>>, vector<1x4x1x8xf32>
    %201 = vector.shape_cast %200 : vector<1x4x1x8xf32> to vector<4x8xf32>
    %c1_347 = arith.constant 1 : index
    %c0_348 = arith.constant 0 : index
    %c16_349 = arith.constant 16 : index
    %c8_350 = arith.constant 8 : index
    %202 = vector.load %arg7[%c1_347, %c0_348, %c16_349, %c8_350] : memref<2x4x24x16xf32, #tpu.memory_space<vmem>>, vector<1x4x1x8xf32>
    %203 = vector.shape_cast %202 : vector<1x4x1x8xf32> to vector<4x8xf32>
    %c1_351 = arith.constant 1 : index
    %c0_352 = arith.constant 0 : index
    %c17_353 = arith.constant 17 : index
    %c8_354 = arith.constant 8 : index
    %204 = vector.load %arg7[%c1_351, %c0_352, %c17_353, %c8_354] : memref<2x4x24x16xf32, #tpu.memory_space<vmem>>, vector<1x4x1x8xf32>
    %205 = vector.shape_cast %204 : vector<1x4x1x8xf32> to vector<4x8xf32>
    %c1_355 = arith.constant 1 : index
    %c0_356 = arith.constant 0 : index
    %c18_357 = arith.constant 18 : index
    %c8_358 = arith.constant 8 : index
    %206 = vector.load %arg7[%c1_355, %c0_356, %c18_357, %c8_358] : memref<2x4x24x16xf32, #tpu.memory_space<vmem>>, vector<1x4x1x8xf32>
    %207 = vector.shape_cast %206 : vector<1x4x1x8xf32> to vector<4x8xf32>
    %c1_359 = arith.constant 1 : index
    %c0_360 = arith.constant 0 : index
    %c19_361 = arith.constant 19 : index
    %c8_362 = arith.constant 8 : index
    %208 = vector.load %arg7[%c1_359, %c0_360, %c19_361, %c8_362] : memref<2x4x24x16xf32, #tpu.memory_space<vmem>>, vector<1x4x1x8xf32>
    %209 = vector.shape_cast %208 : vector<1x4x1x8xf32> to vector<4x8xf32>
    %c1_363 = arith.constant 1 : index
    %c0_364 = arith.constant 0 : index
    %c20_365 = arith.constant 20 : index
    %c8_366 = arith.constant 8 : index
    %210 = vector.load %arg7[%c1_363, %c0_364, %c20_365, %c8_366] : memref<2x4x24x16xf32, #tpu.memory_space<vmem>>, vector<1x4x1x8xf32>
    %211 = vector.shape_cast %210 : vector<1x4x1x8xf32> to vector<4x8xf32>
    %c1_367 = arith.constant 1 : index
    %c0_368 = arith.constant 0 : index
    %c21_369 = arith.constant 21 : index
    %c8_370 = arith.constant 8 : index
    %212 = vector.load %arg7[%c1_367, %c0_368, %c21_369, %c8_370] : memref<2x4x24x16xf32, #tpu.memory_space<vmem>>, vector<1x4x1x8xf32>
    %213 = vector.shape_cast %212 : vector<1x4x1x8xf32> to vector<4x8xf32>
    %c1_371 = arith.constant 1 : index
    %c0_372 = arith.constant 0 : index
    %c22_373 = arith.constant 22 : index
    %c8_374 = arith.constant 8 : index
    %214 = vector.load %arg7[%c1_371, %c0_372, %c22_373, %c8_374] : memref<2x4x24x16xf32, #tpu.memory_space<vmem>>, vector<1x4x1x8xf32>
    %215 = vector.shape_cast %214 : vector<1x4x1x8xf32> to vector<4x8xf32>
    %c1_375 = arith.constant 1 : index
    %c0_376 = arith.constant 0 : index
    %c23_377 = arith.constant 23 : index
    %c8_378 = arith.constant 8 : index
    %216 = vector.load %arg7[%c1_375, %c0_376, %c23_377, %c8_378] : memref<2x4x24x16xf32, #tpu.memory_space<vmem>>, vector<1x4x1x8xf32>
    %217 = vector.shape_cast %216 : vector<1x4x1x8xf32> to vector<4x8xf32>
    %218 = tpu.concatenate %171, %173, %175, %177, %179, %181, %183, %185, %187, %189, %191, %193, %195, %197, %199, %201 in 1 : vector<4x8xf32>, vector<4x8xf32>, vector<4x8xf32>, vector<4x8xf32>, vector<4x8xf32>, vector<4x8xf32>, vector<4x8xf32>, vector<4x8xf32>, vector<4x8xf32>, vector<4x8xf32>, vector<4x8xf32>, vector<4x8xf32>, vector<4x8xf32>, vector<4x8xf32>, vector<4x8xf32>, vector<4x8xf32> -> vector<4x128xf32>
    %219 = tpu.concatenate %203, %205, %207, %209, %211, %213, %215, %217 in 1 : vector<4x8xf32>, vector<4x8xf32>, vector<4x8xf32>, vector<4x8xf32>, vector<4x8xf32>, vector<4x8xf32>, vector<4x8xf32>, vector<4x8xf32> -> vector<4x64xf32>
    %220 = tpu.concatenate %218, %219 in 1 : vector<4x128xf32>, vector<4x64xf32> -> vector<4x192xf32>
    %221 = tpu.concatenate %67, %118, %169, %220 in 0 : vector<4x192xf32>, vector<4x192xf32>, vector<4x192xf32>, vector<4x192xf32> -> vector<16x192xf32>
    %c0_379 = arith.constant 0 : index
    %c0_380 = arith.constant 0 : index
    %222 = vector.load %arg4[%c0_379, %c0_380] : memref<4x16xf32, #tpu.memory_space<vmem>>, vector<4x16xf32>
    %cst_381 = arith.constant dense<0.000000e+00> : vector<4x192xf32>
    %223 = tpu.matmul %222, %221, %cst_381 {dimension_numbers = #tpu.dot_dimension_numbers<[1], [0], [0], [1], [0, 0, 1, 1], [], []>} : vector<4x16xf32>, vector<16x192xf32>, vector<4x192xf32> -> vector<4x192xf32>
    %c0_382 = arith.constant 0 : index
    %c0_383 = arith.constant 0 : index
    %224 = vector.load %arg5[%c0_382, %c0_383] : memref<4x1xf32, #tpu.memory_space<vmem>>, vector<4x1xf32>
    %225 = vector.broadcast %224 : vector<4x1xf32> to vector<4x192xf32>
    %226 = arith.addf %223, %225 : vector<4x192xf32>
    %c0_384 = arith.constant 0 : index
    %c0_385 = arith.constant 0 : index
    %c0_386 = arith.constant 0 : index
    %227 = vector.load %arg6[%c0_384, %c0_385, %c0_386] : memref<1x4x192xf32, #tpu.memory_space<vmem>>, vector<1x4x192xf32>
    %228 = vector.shape_cast %227 : vector<1x4x192xf32> to vector<4x192xf32>
    %229 = vector.shape_cast %226 : vector<4x192xf32> to vector<1x4x192xf32>
    tpu.vector_store %arg6[%c0_384, %c0_385, %c0_386], %229 {strides = array<i32>} : memref<1x4x192xf32, #tpu.memory_space<vmem>>, vector<1x4x192xf32>,
    return
  }
  func.func @transform_0(%arg0: i32, %arg1: i32) -> (i32, i32, i32, i32) {
    %c0_i32 = arith.constant 0 : i32
    %c0_i32_0 = arith.constant 0 : i32
    %c0_i32_1 = arith.constant 0 : i32
    return %arg0, %c0_i32, %arg1, %c0_i32_0 : i32, i32, i32, i32
  }
  func.func @transform_1(%arg0: i32, %arg1: i32) -> (i32, i32) {
    %c0_i32 = arith.constant 0 : i32
    %c0_i32_0 = arith.constant 0 : i32
    %c0_i32_1 = arith.constant 0 : i32
    return %c0_i32, %c0_i32_0 : i32, i32
  }
  func.func @transform_2(%arg0: i32, %arg1: i32) -> (i32, i32) {
    %c0_i32 = arith.constant 0 : i32
    %c0_i32_0 = arith.constant 0 : i32
    %c0_i32_1 = arith.constant 0 : i32
    return %c0_i32, %c0_i32_0 : i32, i32
  }
  func.func @transform_3(%arg0: i32, %arg1: i32) -> (i32, i32) {
    %c0_i32 = arith.constant 0 : i32
    %c0_i32_0 = arith.constant 0 : i32
    %c0_i32_1 = arith.constant 0 : i32
    return %c0_i32, %c0_i32_0 : i32, i32
  }
  func.func @transform_4(%arg0: i32, %arg1: i32) -> (i32, i32, i32) {
    %c0_i32 = arith.constant 0 : i32
    %c0_i32_0 = arith.constant 0 : i32
    return %arg0, %c0_i32, %arg1 : i32, i32, i32
  }
}

</mosaic_0001>

<bundles_post_ra>
// kernel: tpu_custom_call.1
= control target key start
LH: loop header
LB: loop body
LE: loop exit
PB: predicated region body
PF: predicated region fallthrough
CT: control target
= control target key end

     0   :  { %s3214_s0 = inlined_call_operand.hbm [shape: f32[2,4,24,32], index: 0, kind: input, shape index: {}]   ;;  %s3215_s1 = inlined_call_operand.hbm [shape: f32[16,16], index: 1, kind: input, shape index: {}]   ;;  %s3216_s2 = inlined_call_operand.vmem [shape: f32[4,16], index: 2, kind: input, shape index: {}]   ;;  %s3217_s3 = inlined_call_operand.vmem [shape: f32[4,1], index: 3, kind: input, shape index: {}]   ;;  %s3218_s4 = inlined_call_operand.hbm [shape: f32[2,4,192], index: 4, kind: output, shape index: {}]  }
   0x1   :  { %3220 = sst [smem:[#allocation12_spill]] %s3215_s1 }
   0x2   :  { %9 = vsyncpa [#allocation4], 0 }
   0x3   :  { %11 = vsyncpa [#allocation4 + $0x1], 0 }
   0x4   :  { %12 = vsyncpa [#allocation7], 0 }
   0x5   :  { %13 = vsyncpa [#allocation5], 0 }
   0x6   :  { %15 = vsyncpa [#allocation5 + $0x1], 0  ;;  %s2293_s15 = smov 0   ;;  %s2295_s16 = smov 0  }
   0x7   :  { %s2297_s17 = smov 0   ;;  %s2299_s18 = smov 0  }
   0x8   :  { %s2301_s19 = smov 0   ;;  %s2303_s20 = smov 0  }
   0x9 LB: > { %s1746_s21 = sadd.s32 4294967295, %s2247_s20   ;;  %s1747_s22 = sadd.s32 4294967294, %s2247_s20   ;;  %s2247_s20 = sphi %s2303_s20, %s21_s20   ;;  %s2243_s19 = sphi %s2301_s19, %s3233_s19   ;;  %s2239_s18 = sphi %s2299_s18, %s3232_s18   ;;  %s2235_s17 = sphi %s2297_s17, %s3231_s17   ;;  %s2231_s16 = sphi %s2295_s16, %s3230_s16   ;;  %s2227_s15 = sphi %s2293_s15, %s3229_s15  }
   0xa   : > { %p55_p0 = scmp.ne.s32.totalorder %s2231_s16, %s2227_s15  ;;  %p2327_p1 = scmp.eq.s32.totalorder %s1746_s21, 0 }
   0xb   : > { %p2331_p2 = scmp.eq.s32.totalorder %s1746_s21, 1  ;;  %p150_p3 = scmp.eq.s32.totalorder %s1747_s22, 1 }
   0xc   : > { %p2337_p4 = por %p2327_p1, %p55_p0  ;;  %p1748_p5 = scmp.ge.s32.totalorder %s2247_s20, 1 }
   0xd   : > { %p2342_p6 = por %p150_p3, %p55_p0  ;;  %p157_p7 = scmp.lt.s32.totalorder %s2247_s20, 3 }
   0xe   : > { %s3225_s1 = sld [smem:[#allocation12_spill]]  ;;  %s2249_s5 = smov [#allocation6]  }
   0xf   : > { %p2350_p8 = pnand %p1748_p5, %p157_p7  ;;  %s170_s6 = sshll.u32 %s2249_s5, 4  ;;  %s171_s6 = int_to_ptr.vmem [resolvable:$true] %s170_s6 }
  0x10   : > { %p1750_p11 = scmp.ge.s32.totalorder %s2247_s20, 2  ;;  %s3219_s7 = smov 128  }
  0x11   : > { %p1802_p9 = pneg %p2350_p8  ;;  %s2251_s8 = smov 8  }
  0x12   : > { %s33_s9 = sadd.s32 1, %s2243_s19  ;;  %s42_s10 = sadd.s32 1, %s2235_s17 }
  0x13   : > { %p1803_p10 = pnand %p1802_p9, %p2327_p1  ;;  %p35_p12 = scmp.ge.s32.totalorder %s33_s9, 2 }
  0x14   : > { %s168_s29 = sshll.u32 %s3225_s1, 4  ;;  %p49_p13 = scmp.ne.s32.totalorder %s2235_s17, %s2231_s16  ;;  %s169_s29 = int_to_ptr.hbm [resolvable:$true] %s168_s29 }
  0x15   : > { %1805 = dma.hbm_to_vmem [thread:$0]  (!%p1803_p10), %s169_s29, 256, %s171_s6, [#allocation7], %s3219_s7, %s3219_s7, %s2251_s8  }
  0x16   : > { %p50_p0 = scmp.eq.s32.totalorder %s2247_s20, 0  ;;  %s3235_s9 = smov (%p35_p12, %s33_s9), 0 }
  0x17   : > { %p2371_p5 = por %p2331_p2, %p49_p13  ;;  %s37_s12 = ssub.s32 %s2243_s19, %s3235_s9 }
  0x18   : > { %p51_p3 = por %p50_p0, %p49_p13  ;;  %p1815_p7 = scmp.lt.s32.totalorder %s2247_s20, 2 }
  0x19   : > { %p40_p9 = scmp.eq.s32.totalorder %s37_s12, 0  ;;  %s190_s13 = sand.u32 1, %s2235_s17  }
  0x1a   : > { %s1791_s14 = smul.u32 96, %s190_s13  ;;  %p1807_p10 = pnand %p1815_p7, %p51_p3 }
  0x1b   : > { %s2380_s21 = scalar_select %p40_p9, %s2235_s17, %s42_s10  }
  0x1c   : > { %s1792_s22 = smul.u32 96, %s2243_s19  ;;  %s194_s27 = scalar_lea.vmem [#allocation3], %s1791_s14 }
  0x1d   : > { %s204_s28 = sshll.u32 %s194_s27, 4  ;;  %s191_s7 = scalar_lea.sflag [#allocation4], %s190_s13  ;;  %s205_s28 = int_to_ptr.vmem [resolvable:$true] %s204_s28 }
  0x1e   : > { %s201_s6 = scalar_lea.hbm %s3214_s0, %s1792_s22  ;;  %s3228_s1 = smov 128  }
  0x1f   : > { %s202_s24 = sshll.u32 %s201_s6, 4  ;;  %216 = sbr.rel (%p2350_p8) target bundleno = 690 (0x2b2), region = 36  ;;  %s203_s24 = int_to_ptr.hbm [resolvable:$true] %s202_s24 }
  0x20   : > { %1809 = dma.hbm_to_vmem [thread:$0]  (!%p1807_p10), %s203_s24, 1536, %s205_s28, %s191_s7, %s3228_s1, %s3228_s1, %s2251_s8  }
  0x21   : > { %s2392_s10 = sand.u32 (!%p2350_p8), 1, %s2231_s16  }
  0x22   : > { %s1793_s12 = smul.u32 (!%p2350_p8), 96, %s2392_s10  ;;  %s219_s14 = scalar_lea.sflag (!%p2350_p8), [#allocation4], %s2392_s10 }
  0x24   : > { %s2396_s22 = scalar_lea.vmem [#allocation3], %s1793_s12 }
  0x25   : > { %2214 = dma.done.wait (%p2337_p4), %s219_s14, 1536  }
  0x26   : > { %2216 = vsyncadd (%p2337_p4), %s219_s14, 4294965760 }
  0x27   : > { %2218 = dma.done.wait (%p2327_p1), [#allocation7], 256  }
  0x28   : > { %2220 = vsyncadd (%p2327_p1), [#allocation7], 4294967040  ;;  %v373_v0 = vld [vmem:[%s2396_s22 + $0x10] sm:$0xff]  ;;  %v371_v1 = vld [vmem:[%s2396_s22] sm:$0xff]  ;;  %s2252_s1 = smov 112   ;;  %vm269_vm0 = vcmask 130048  }
  0x29   : > { %v256_v2 = vld [vmem:[#allocation6 + $0x8] sm:$0xff]  ;;  %399 = vrot.lane.b32.xlu1 %v373_v0, %s2252_s1  ;;  %395 = vrot.lane.b32.xlu0 %v371_v1, %s2252_s1  ;;  %v255_v3 = vld [vmem:[#allocation6] sm:$0xff]  ;;  %v264_v4 = vld [vmem:[%s2396_s22 + $0x38] sm:$0xff]  ;;  %vm610_vm1 = vcmask 1041409   ;;  %vm613_vm2 = vcmask 1042434   ;;  %vm616_vm3 = vcmask 1043459  }
  0x2a   : > { %320 = vmatpush.msra.mxu0 %v256_v2  ;;  %1787 = vmatpush.msra.mxu2 %v256_v2  ;;  %v260_v5 = vld [vmem:[%s2396_s22 + $0x18] sm:$0xff]  ;;  %v372_v6 = vld [vmem:[%s2396_s22 + $0x8] sm:$0xff]  ;;  %v265_v7 = vld [vmem:[%s2396_s22 + $0x40] sm:$0xff]  ;;  %s2253_s23 = smov 120   ;;  %s2254_s25 = smov 24   ;;  %vm814_vm4 = vcmask 64512  }
  0x2b   : > { %457 = vmatpush.msra.mxu1 %v256_v2  ;;  %1789 = vmatpush.msra.mxu3 %v256_v2  ;;  %v266_v8 = vld [vmem:[%s2396_s22 + $0x48] sm:$0xff]  ;;  %v375_v9 = vld [vmem:[%s2396_s22 + $0x20] sm:$0xff]  ;;  %v267_v11 = vld [vmem:[%s2396_s22 + $0x50] sm:$0xff]  ;;  %s2255_s30 = smov 8   ;;  %s2256_s7 = smov 16   ;;  %vm817_vm5 = vcmask 195584  }
  0x2c   : > { %321 = vmatpush.msra.mxu0 %v255_v3  ;;  %1788 = vmatpush.msra.mxu2 %v255_v3  ;;  %v262_v10 = vld [vmem:[%s2396_s22 + $0x28] sm:$0xff]  ;;  %v377_v12 = vld [vmem:[%s2396_s22 + $0x30] sm:$0xff]  ;;  %v268_v13 = vld [vmem:[%s2396_s22 + $0x58] sm:$0xff]  ;;  %s2257_s8 = smov 48   ;;  %s2258_s13 = smov 32   ;;  %vm819_vm6 = vcmask 261120  }
  0x2d   : > { %1755 = vmatmul.msk.f32.vlgmr.msra.gmra.mxu0 %vm269_vm0, %v371_v1  ;;  %1762 = vmatmul.msk.f32.vlgmr.msra.gmra.mxu2 %vm269_vm0, %v264_v4  ;;  %s2259_s27 = smov 40   ;;  %s2260_s28 = smov 56   ;;  %vm821_vm7 = vcmask 326656   ;;  %vm823_vm8 = vcmask 392192   ;;  %vm825_vm9 = vcmask 457728   ;;  %vm827_vm10 = vcmask 523264  }
  0x2e   : > { %401 = vrot.lane.b32.xlu2 %v260_v5, %s2252_s1  ;;  %458 = vmatpush.msra.mxu1 %v255_v3  ;;  %s2261_s29 = smov 64   ;;  %s2262_s5 = smov 80   ;;  %vm829_vm11 = vcmask 588800   ;;  %vm831_vm12 = vcmask 654336   ;;  %vm833_vm13 = vcmask 719872   ;;  %vm835_vm14 = vcmask 785408  }
  0x2f   : > { %1790 = vmatpush.msra.mxu3 %v255_v3  ;;  %s2263_s6 = smov 72   ;;  %s2264_s24 = smov 88   ;;  %vm837_vm15 = vcmask 850944  }
  0x30   : > { %s2265_s12 = smov 104   ;;  %s2266_s14 = smov 96  }
  0x31   : > { %409 = vrot.lane.b32.xlu1 %v264_v4, %s2252_s1  ;;  %397 = vrot.lane.b32.xlu0 %v372_v6, %s2252_s1  ;;  %s2181_s22 = scalar_lea.hbm %s3218_s4, 16 }
  0x35   : > { %1756 = vmatmul.msk.f32.gmra.mxu0 %vm269_vm0, %v372_v6  ;;  %1763 = vmatmul.msk.f32.gmra.mxu2 %vm269_vm0, %v265_v7 }
  0x36   : > { %411 = vrot.lane.b32.xlu2 %v265_v7, %s2252_s1 }
  0x39   : > { %413 = vrot.lane.b32.xlu1 %v266_v8, %s2252_s1  ;;  %403 = vrot.lane.b32.xlu0 %v375_v9, %s2252_s1 }
  0x3d   : > { %1757 = vmatmul.msk.f32.gmra.mxu0 %vm269_vm0, %v373_v0  ;;  %1764 = vmatmul.msk.f32.gmra.mxu2 %vm269_vm0, %v266_v8 }
  0x3e   : > { %405 = vrot.lane.b32.xlu2 %v262_v10, %s2252_s1 }
  0x41   : > { %415 = vrot.lane.b32.xlu0 %v267_v11, %s2252_s1  ;;  %407 = vrot.lane.b32.xlu1 %v377_v12, %s2252_s1 }
  0x45   : > { %1758 = vmatmul.msk.f32.gmra.mxu0 %vm269_vm0, %v260_v5  ;;  %1765 = vmatmul.msk.f32.gmra.mxu2 %vm269_vm0, %v267_v11 }
  0x46   : > { %417 = vrot.lane.b32.xlu2 %v268_v13, %s2252_s1 }
  0x4d   : > { %1759 = vmatmul.msk.f32.gmra.mxu0 %vm269_vm0, %v375_v9  ;;  %1766 = vmatmul.msk.f32.gmra.mxu2 %vm269_vm0, %v268_v13 }
  0x55   : > { %1760 = vmatmul.msk.f32.gmra.mxu0 %vm269_vm0, %v262_v10 }
  0x5d   : > { %1761 = vmatmul.msk.f32.gmra.mxu0 %vm269_vm0, %v377_v12 }
  0x88   : > { %v402_v16 = vpop.permute.xlu2 %401 }
  0x90   : > { %v412_v19 = vpop.permute.xlu2 %411 }
  0x98   : > { %v406_v25 = vpop.permute.xlu2 %405 }
  0x9b   : > { %v400_v14 = vpop.permute.xlu1 %399  ;;  %v396_v15 = vpop.permute.xlu0 %395 }
  0x9c   : > { %1767 = vmatmul.msk.f32.vlgmr.msra.gmra.mxu1 %vm269_vm0, %v396_v15 }
  0xa0   : > { %v418_v30 = vpop.permute.xlu2 %417 }
  0xa3   : > { %v410_v17 = vpop.permute.xlu1 %409  ;;  %v398_v18 = vpop.permute.xlu0 %397 }
  0xa4   : > { %1768 = vmatmul.msk.f32.gmra.mxu1 %vm269_vm0, %v398_v18  ;;  %1774 = vmatmul.msk.f32.vlgmr.msra.gmra.mxu3 %vm269_vm0, %v410_v17 }
  0xaa   : > { %v323_v20 = vpop.f32.mrf.mxu0 }
  0xab   : > { %359 = vst.msk [vmem:[#allocation2] sm:$0xff] %vm269_vm0, %v323_v20  ;;  %v404_v21 = vpop.permute.xlu0 %403  ;;  %v414_v23 = vpop.permute.xlu1 %413 }
  0xac   : > { %1769 = vmatmul.msk.f32.gmra.mxu1 %vm269_vm0, %v400_v14  ;;  %1775 = vmatmul.msk.f32.gmra.mxu3 %vm269_vm0, %v412_v19 }
  0xb0   : > { %v344_v22 = vpop.f32.mrf.mxu2 }
  0xb1   : > { %366 = vst.msk [vmem:[#allocation2 + $0x38] sm:$0xff] %vm269_vm0, %v344_v22 }
  0xb2   : > { %v326_v24 = vpop.f32.mrf.mxu0  ;;  %v521_v59 = vld [vmem:[#allocation2 + $0x3] sm:$0x1]  ;;  %v513_v0 = vld [vmem:[#allocation2 + $0x1] sm:$0x1]  ;;  %v517_v6 = vld [vmem:[#allocation2 + $0x2] sm:$0x1] }
  0xb3   : > { %360 = vst.msk [vmem:[#allocation2 + $0x8] sm:$0xff] %vm269_vm0, %v326_v24  ;;  %v416_v27 = vpop.permute.xlu0 %415  ;;  %v408_v33 = vpop.permute.xlu1 %407  ;;  %v533_v7 = vld [vmem:[#allocation2 + $0x6] sm:$0x1] }
  0xb4   : > { %1770 = vmatmul.msk.f32.gmra.mxu1 %vm269_vm0, %v402_v16  ;;  %1776 = vmatmul.msk.f32.gmra.mxu3 %vm269_vm0, %v414_v23 }
  0xb8   : > { %v347_v26 = vpop.f32.mrf.mxu2 }
  0xb9   : > { %367 = vst.msk [vmem:[#allocation2 + $0x40] sm:$0xff] %vm269_vm0, %v347_v26 }
  0xba   : > { %v329_v28 = vpop.f32.mrf.mxu0 }
  0xbb   : > { %361 = vst.msk [vmem:[#allocation2 + $0x10] sm:$0xff] %vm269_vm0, %v329_v28 }
  0xbc   : > { %1771 = vmatmul.msk.f32.gmra.mxu1 %vm269_vm0, %v404_v21  ;;  %1777 = vmatmul.msk.f32.gmra.mxu3 %vm269_vm0, %v416_v27 }
  0xc0   : > { %v350_v29 = vpop.f32.mrf.mxu2  ;;  %v2463_v35 = vld [vmem:[#allocation2 + $0x40] sm:$0x1]  ;;  %v2465_v36 = vld [vmem:[#allocation2 + $0x43] sm:$0x1]  ;;  %v2467_v37 = vld [vmem:[#allocation2 + $0x41] sm:$0x1] }
  0xc1   : > { %368 = vst.msk [vmem:[#allocation2 + $0x48] sm:$0xff] %vm269_vm0, %v350_v29  ;;  %v2469_v38 = vld [vmem:[#allocation2 + $0x42] sm:$0x1]  ;;  %v849_v41 = vrot.slane %v2463_v35, 6  ;;  %v886_v42 = vrot.slane %v2465_v36, 6  ;;  %v860_v44 = vrot.slane %v2467_v37, 6 }
  0xc2   : > { %v332_v31 = vpop.f32.mrf.mxu0  ;;  %v873_v45 = vrot.slane %v2469_v38, 6  ;;  %v2487_v55 = vld [vmem:[#allocation2 + $0x46] sm:$0x1]  ;;  %v2493_v58 = vld [vmem:[#allocation2 + $0x44] sm:$0x1] }
  0xc3   : > { %362 = vst.msk [vmem:[#allocation2 + $0x18] sm:$0xff] %vm269_vm0, %v332_v31  ;;  %v2501_v5 = vld [vmem:[#allocation2 + $0x45] sm:$0x1]  ;;  %v925_v8 = vrot.slane %v2487_v55, 6  ;;  %v899_v11 = vrot.slane %v2493_v58, 6 }
  0xc4   : > { %1772 = vmatmul.msk.f32.gmra.mxu1 %vm269_vm0, %v406_v25  ;;  %1778 = vmatmul.msk.f32.gmra.mxu3 %vm269_vm0, %v418_v30  ;;  %v573_v12 = vld [vmem:[#allocation2 + $0x10] sm:$0x1]  ;;  %v585_v14 = vld [vmem:[#allocation2 + $0x13] sm:$0x1]  ;;  %v577_v16 = vld [vmem:[#allocation2 + $0x11] sm:$0x1] }
  0xc5   : > { %v581_v21 = vld [vmem:[#allocation2 + $0x12] sm:$0x1]  ;;  %v912_v23 = vrot.slane %v2501_v5, 6  ;;  %v509_v5 = vld [vmem:[#allocation2] sm:$0x1] }
  0xc8   : > { %v353_v32 = vpop.f32.mrf.mxu2  ;;  %v2471_v39 = vld [vmem:[#allocation2 + $0x4b] sm:$0x1]  ;;  %v2475_v43 = vld [vmem:[#allocation2 + $0x49] sm:$0x1]  ;;  %v2481_v48 = vld [vmem:[#allocation2 + $0x4a] sm:$0x1] }
  0xc9   : > { %369 = vst.msk [vmem:[#allocation2 + $0x50] sm:$0xff] %vm269_vm0, %v353_v32  ;;  %v653_v47 = vrot.slane %v2471_v39, 5  ;;  %v627_v53 = vrot.slane %v2475_v43, 5  ;;  %v2485_v54 = vld [vmem:[#allocation2 + $0x4e] sm:$0x1]  ;;  %v640_v61 = vrot.slane %v2481_v48, 5 }
  0xca   : > { %v335_v34 = vpop.f32.mrf.mxu0  ;;  %v522_v46 = vld [vmem:[#allocation2 + $0x1b] sm:$0x1]  ;;  %v514_v50 = vld [vmem:[#allocation2 + $0x19] sm:$0x1]  ;;  %v518_v51 = vld [vmem:[#allocation2 + $0x1a] sm:$0x1] }
  0xcb   : > { %363 = vst.msk [vmem:[#allocation2 + $0x20] sm:$0xff] %vm269_vm0, %v335_v34  ;;  %v534_v52 = vld [vmem:[#allocation2 + $0x1e] sm:$0x1]  ;;  %v2489_v56 = vld [vmem:[#allocation2 + $0x1c] sm:$0x1]  ;;  %v649_v60 = vrot.slane %v522_v46, 7 }
  0xcc   : > { %1773 = vmatmul.msk.f32.gmra.mxu1 %vm269_vm0, %v408_v33  ;;  %v2491_v57 = vld [vmem:[#allocation2 + $0x4c] sm:$0x1]  ;;  %v2496_v62 = vld [vmem:[#allocation2 + $0x1d] sm:$0x1]  ;;  %v2498_v63 = vld [vmem:[#allocation2 + $0x4d] sm:$0x1] }
  0xcd   : > { %v623_v1 = vrot.slane %v514_v50, 7  ;;  %v636_v2 = vrot.slane %v518_v51, 7  ;;  %v688_v3 = vrot.slane %v534_v52, 7  ;;  %v692_v4 = vrot.slane %v2485_v54, 5  ;;  %v597_v34 = vld [vmem:[#allocation2 + $0x16] sm:$0x1] }
  0xce   : > { %v662_v9 = vrot.slane %v2489_v56, 7  ;;  %v666_v10 = vrot.slane %v2491_v57, 5  ;;  %v675_v17 = vrot.slane %v2496_v62, 7  ;;  %v679_v18 = vrot.slane %v2498_v63, 5  ;;  %v525_v52 = vld [vmem:[#allocation2 + $0x4] sm:$0x1] }
  0xcf   : > { %v2511_v27 = vsel %vm610_vm1, %v649_v60, %v521_v59  ;;  %v624_v31 = vsel %vm610_vm1, %v623_v1, %v513_v0  ;;  %v637_v46 = vsel %vm610_vm1, %v636_v2, %v517_v6  ;;  %v2517_v51 = vsel %vm610_vm1, %v688_v3, %v533_v7  ;;  %v529_v56 = vld [vmem:[#allocation2 + $0x5] sm:$0x1]  ;;  %v2519_v59 = vld [vmem:[#allocation2 + $0x1f] sm:$0x1] }
  0xd0   : > { %v356_v40 = vpop.f32.mrf.mxu2  ;;  %v701_v36 = vrot.slane %v2519_v59, 7  ;;  %v663_v38 = vsel %vm610_vm1, %v662_v9, %v525_v52 }
  0xd1   : > { %370 = vst.msk [vmem:[#allocation2 + $0x58] sm:$0xff] %vm269_vm0, %v356_v40 }
  0xd2   : > { %v338_v49 = vpop.f32.mrf.mxu0 }
  0xd3   : > { %364 = vst.msk [vmem:[#allocation2 + $0x28] sm:$0xff] %vm269_vm0, %v338_v49 }
  0xd8   : > { %v576_v13 = vld [vmem:[#allocation2 + $0x58] sm:$0x1]  ;;  %v588_v15 = vld [vmem:[#allocation2 + $0x5b] sm:$0x1]  ;;  %v580_v20 = vld [vmem:[#allocation2 + $0x59] sm:$0x1] }
  0xd9   : > { %v851_v19 = vrot.slane %v576_v13, 5  ;;  %v584_v22 = vld [vmem:[#allocation2 + $0x5a] sm:$0x1]  ;;  %v888_v40 = vrot.slane %v588_v15, 5  ;;  %v2524_v15 = vld [vmem:[#allocation2 + $0x18] sm:$0x1] }
  0xda   : > { %v341_v24 = vpop.f32.mrf.mxu0  ;;  %v574_v25 = vld [vmem:[#allocation2 + $0x28] sm:$0x1]  ;;  %v586_v26 = vld [vmem:[#allocation2 + $0x2b] sm:$0x1]  ;;  %v578_v28 = vld [vmem:[#allocation2 + $0x29] sm:$0x1] }
  0xdb   : > { %365 = vst.msk [vmem:[#allocation2 + $0x30] sm:$0xff] %vm269_vm0, %v341_v24  ;;  %v847_v29 = vrot.slane %v574_v25, 7  ;;  %v884_v30 = vrot.slane %v586_v26, 7  ;;  %v858_v32 = vrot.slane %v578_v28, 7  ;;  %v582_v33 = vld [vmem:[#allocation2 + $0x2a] sm:$0x1] }
  0xdc   : > { %v871_v49 = vrot.slane %v582_v33, 7  ;;  %v598_v50 = vld [vmem:[#allocation2 + $0x2e] sm:$0x1]  ;;  %v590_v13 = vld [vmem:[#allocation2 + $0x2c] sm:$0x1]  ;;  %v862_v3 = vrot.slane %v580_v20, 5 }
  0xdd   : > { %v848_v60 = vsel %vm610_vm1, %v847_v29, %v573_v12  ;;  %v885_v62 = vsel %vm610_vm1, %v884_v30, %v585_v14  ;;  %v859_v0 = vsel %vm610_vm1, %v858_v32, %v577_v16  ;;  %v923_v1 = vrot.slane %v598_v50, 7  ;;  %v2530_v24 = vld [vmem:[#allocation2 + $0x5e] sm:$0x1]  ;;  %v594_v25 = vld [vmem:[#allocation2 + $0x2d] sm:$0x1] }
  0xde   : > { %v850_v2 = vsel %vm613_vm2, %v849_v41, %v848_v60  ;;  %v872_v6 = vsel %vm610_vm1, %v871_v49, %v581_v21  ;;  %v875_v7 = vrot.slane %v584_v22, 5  ;;  %v887_v14 = vsel %vm613_vm2, %v886_v42, %v885_v62  ;;  %v589_v16 = vld [vmem:[#allocation2 + $0x14] sm:$0x1]  ;;  %v593_v21 = vld [vmem:[#allocation2 + $0x15] sm:$0x1] }
  0xdf   : > { %v2533_v12 = vsel %vm616_vm3, %v851_v19, %v850_v2  ;;  %v861_v35 = vsel %vm613_vm2, %v860_v44, %v859_v0  ;;  %v874_v41 = vsel %vm613_vm2, %v873_v45, %v872_v6  ;;  %v924_v19 = vsel %vm610_vm1, %v923_v1, %v597_v34  ;;  %v592_v44 = vld [vmem:[#allocation2 + $0x5c] sm:$0x1]  ;;  %v596_v22 = vld [vmem:[#allocation2 + $0x5d] sm:$0x1]  ;;  %v602_v6 = vld [vmem:[#allocation2 + $0x2f] sm:$0x1] }
  0xe0   : > { %1013 = vrot.lane.b32.xlu2 %v2533_v12, %s2253_s23  ;;  %v897_v20 = vrot.slane %v590_v13, 7  ;;  %v609_v42 = vrot.slane %v2524_v15, 7  ;;  %v927_v37 = vrot.slane %v2530_v24, 5  ;;  %v676_v45 = vsel %vm610_vm1, %v675_v17, %v529_v56 }
  0xe1   : > { %v910_v26 = vrot.slane %v594_v25, 7  ;;  %v2553_v29 = vsel %vm616_vm3, %v888_v40, %v887_v14  ;;  %v2556_v32 = vsel %vm616_vm3, %v862_v3, %v861_v35  ;;  %v2559_v34 = vsel %vm616_vm3, %v875_v7, %v874_v41  ;;  %v570_v25 = vld [vmem:[#allocation2 + $0x27] sm:$0x1]  ;;  %v540_v41 = vld [vmem:[#allocation2 + $0x4f] sm:$0x1] }
  0xe2   : > { %v523_v28 = vld [vmem:[#allocation2 + $0x33] sm:$0x1]  ;;  %v515_v30 = vld [vmem:[#allocation2 + $0x31] sm:$0x1]  ;;  %v519_v33 = vld [vmem:[#allocation2 + $0x32] sm:$0x1]  ;;  %v926_v9 = vsel %vm613_vm2, %v925_v8, %v924_v19  ;;  %v898_v56 = vsel %vm610_vm1, %v897_v20, %v589_v16 }
  0xe3   : > { %v651_v49 = vrot.slane %v523_v28, 6  ;;  %v625_v50 = vrot.slane %v515_v30, 6  ;;  %v638_v17 = vrot.slane %v519_v33, 6  ;;  %v535_v52 = vld [vmem:[#allocation2 + $0x36] sm:$0x1]  ;;  %v901_v62 = vrot.slane %v592_v44, 5 }
  0xe4   : > { %v690_v40 = vrot.slane %v535_v52, 6  ;;  %v527_v60 = vld [vmem:[#allocation2 + $0x34] sm:$0x1]  ;;  %v911_v0 = vsel %vm610_vm1, %v910_v26, %v593_v21  ;;  %v914_v1 = vrot.slane %v596_v22, 5  ;;  %v531_v3 = vld [vmem:[#allocation2 + $0x35] sm:$0x1] }
  0xe5   : > { %v652_v13 = vsel %vm613_vm2, %v651_v49, %v2511_v27  ;;  %v626_v2 = vsel %vm613_vm2, %v625_v50, %v624_v31  ;;  %v639_v55 = vsel %vm613_vm2, %v638_v17, %v637_v46  ;;  %v664_v8 = vrot.slane %v527_v60, 6  ;;  %v603_v46 = vld [vmem:[#allocation2 + $0x47] sm:$0x1]  ;;  %v539_v35 = vld [vmem:[#allocation2 + $0x37] sm:$0x1] }
  0xe6   : > { %v2573_v7 = vsel %vm616_vm3, %v653_v47, %v652_v13  ;;  %v2578_v24 = vsel %vm616_vm3, %v627_v53, %v626_v2  ;;  %v2583_v27 = vsel %vm616_vm3, %v640_v61, %v639_v55  ;;  %v900_v31 = vsel %vm613_vm2, %v899_v11, %v898_v56  ;;  %v537_v53 = vld [vmem:[#allocation2 + $0x7] sm:$0x1]  ;;  %v601_v61 = vld [vmem:[#allocation2 + $0x17] sm:$0x1]  ;;  %v511_v19 = vld [vmem:[#allocation2 + $0x30] sm:$0x1] }
  0xe7   : > { %v1895_v39 = vpack.i.bf16 %v2553_v29, %v2573_v7  ;;  %v1885_v47 = vpack.i.bf16 %v2556_v32, %v2578_v24  ;;  %v1890_v43 = vpack.i.bf16 %v2559_v34, %v2583_v27  ;;  %v691_v48 = vsel %vm613_vm2, %v690_v40, %v2517_v51  ;;  %v571_v44 = vld [vmem:[#allocation2 + $0x3f] sm:$0x1]  ;;  %v512_v26 = vld [vmem:[#allocation2 + $0x48] sm:$0x1]  ;;  %v569_v28 = vld [vmem:[#allocation2 + $0xf] sm:$0x1] }
  0xe8   : > { %v665_v58 = vsel %vm613_vm2, %v664_v8, %v663_v38  ;;  %v677_v14 = vrot.slane %v531_v3, 6  ;;  %v913_v11 = vsel %vm613_vm2, %v912_v23, %v911_v0  ;;  %v936_v16 = vrot.slane %v602_v6, 7  ;;  %v572_v30 = vld [vmem:[#allocation2 + $0x57] sm:$0x1] }
  0xe9   : > { %1896 = vrot.lane.b32.xlu2 %v1895_v39, %s2254_s25  ;;  %1886 = vrot.lane.b32.xlu0 %v1885_v47, %s2255_s30  ;;  %v2603_v51 = vsel %vm616_vm3, %v927_v37, %v926_v9  ;;  %v2606_v20 = vsel %vm616_vm3, %v901_v62, %v900_v31  ;;  %v938_v21 = vrot.slane %v603_v46, 6  ;;  %v2612_v23 = vsel %vm616_vm3, %v692_v4, %v691_v48  ;;  %v604_v4 = vld [vmem:[#allocation2 + $0x5f] sm:$0x1] }
  0xea   : > { %1891 = vrot.lane.b32.xlu1 %v1890_v43, %s2256_s7  ;;  %v2617_v38 = vsel %vm616_vm3, %v666_v10, %v665_v58  ;;  %v678_v37 = vsel %vm613_vm2, %v677_v14, %v676_v45  ;;  %v2621_v22 = vsel %vm616_vm3, %v914_v1, %v913_v11  ;;  %v703_v33 = vrot.slane %v539_v35, 6  ;;  %v542_v43 = vld [vmem:[#allocation2 + $0x20] sm:$0x1]  ;;  %v544_v58 = vld [vmem:[#allocation2 + $0x50] sm:$0x1] }
  0xeb   : > { %v2626_v54 = vsel %vm616_vm3, %v679_v18, %v678_v37  ;;  %v612_v9 = vrot.slane %v511_v19, 6  ;;  %v805_v57 = vrot.slane %v570_v25, 7  ;;  %v702_v10 = vsel %vm610_vm1, %v701_v36, %v537_v53  ;;  %v543_v53 = vld [vmem:[#allocation2 + $0x38] sm:$0x1]  ;;  %v551_v11 = vld [vmem:[#allocation2 + $0x3a] sm:$0x1] }
  0xec   : > { %v937_v45 = vsel %vm610_vm1, %v936_v16, %v601_v61  ;;  %v611_v49 = vsel %vm610_vm1, %v609_v42, %v509_v5  ;;  %v807_v50 = vrot.slane %v571_v44, 6  ;;  %v1910_v63 = vpack.i.bf16 %v2603_v51, %v2612_v23  ;;  %v550_v61 = vld [vmem:[#allocation2 + $0x22] sm:$0x1]  ;;  %v541_v35 = vld [vmem:[#allocation2 + $0x8] sm:$0x1] }
  0xed   : > { %v1900_v18 = vpack.i.bf16 %v2606_v20, %v2617_v38  ;;  %v705_v17 = vrot.slane %v540_v41, 5  ;;  %v806_v52 = vsel %vm610_vm1, %v805_v57, %v569_v28  ;;  %v1905_v59 = vpack.i.bf16 %v2621_v22, %v2626_v54  ;;  %v546_v41 = vld [vmem:[#allocation2 + $0x21] sm:$0x1]  ;;  %v2675_v16 = vld [vmem:[#allocation2 + $0x52] sm:$0x1] }
  0xee   : > { %v940_v36 = vrot.slane %v604_v4, 5  ;;  %v615_v56 = vrot.slane %v512_v26, 5  ;;  %v809_v40 = vrot.slane %v572_v30, 5  ;;  %v704_v15 = vsel %vm613_vm2, %v703_v33, %v702_v10  ;;  %v547_v19 = vld [vmem:[#allocation2 + $0x39] sm:$0x1] }
  0xef   : > { %v939_v42 = vsel %vm613_vm2, %v938_v21, %v937_v45  ;;  %v614_v60 = vsel %vm613_vm2, %v612_v9, %v611_v49  ;;  %v808_v62 = vsel %vm613_vm2, %v807_v50, %v806_v52  ;;  %v2650_v0 = vsel %vm616_vm3, %v705_v17, %v704_v15  ;;  %v2677_v21 = vld [vmem:[#allocation2 + $0x51] sm:$0x1]  ;;  %v554_v37 = vld [vmem:[#allocation2 + $0x23] sm:$0x1]  ;;  %v2679_v26 = vld [vmem:[#allocation2 + $0x3b] sm:$0x1] }
  0xf0   : > { %v2653_v1 = vsel %vm616_vm3, %v940_v36, %v939_v42  ;;  %v2656_v13 = vsel %vm616_vm3, %v615_v56, %v614_v60  ;;  %v2659_v2 = vsel %vm616_vm3, %v809_v40, %v808_v62  ;;  %v714_v14 = vrot.slane %v542_v43, 7  ;;  %v549_v30 = vld [vmem:[#allocation2 + $0xa] sm:$0x1]  ;;  %v2682_v9 = vld [vmem:[#allocation2 + $0x53] sm:$0x1] }
  0xf1   : > { %1911 = vrot.lane.b32.xlu2 %v1910_v63, %s2257_s8  ;;  %1901 = vrot.lane.b32.xlu0 %v1900_v18, %s2258_s13  ;;  %v1915_v55 = vpack.i.bf16 %v2653_v1, %v2650_v0  ;;  %v1920_v8 = vpack.i.bf16 %v2656_v13, %v2659_v2  ;;  %v716_v5 = vrot.slane %v543_v53, 6  ;;  %v718_v44 = vrot.slane %v544_v58, 5  ;;  %v545_v45 = vld [vmem:[#allocation2 + $0x9] sm:$0x1]  ;;  %v553_v18 = vld [vmem:[#allocation2 + $0xb] sm:$0x1] }
  0xf2   : > { %1906 = vrot.lane.b32.xlu1 %v1905_v59, %s2259_s27  ;;  %v715_v28 = vsel %vm610_vm1, %v714_v14, %v541_v35  ;;  %v740_v4 = vrot.slane %v550_v61, 7  ;;  %v727_v33 = vrot.slane %v546_v41, 7  ;;  %v742_v57 = vrot.slane %v551_v11, 6  ;;  %v562_v59 = vld [vmem:[#allocation2 + $0x25] sm:$0x1] }
  0xf3   : > { %v744_v10 = vrot.slane %v2675_v16, 5  ;;  %v729_v49 = vrot.slane %v547_v19, 6  ;;  %v731_v50 = vrot.slane %v2677_v21, 5  ;;  %v753_v17 = vrot.slane %v554_v37, 7  ;;  %v2687_v36 = vld [vmem:[#allocation2 + $0x3d] sm:$0x1] }
  0xf4   : > { %v755_v52 = vrot.slane %v2679_v26, 6  ;;  %v757_v15 = vrot.slane %v2682_v9, 5  ;;  %v2691_v42 = vld [vmem:[#allocation2 + $0x24] sm:$0x1]  ;;  %v717_v62 = vsel %vm613_vm2, %v716_v5, %v715_v28  ;;  %v561_v53 = vld [vmem:[#allocation2 + $0xd] sm:$0x1] }
  0xf5   : > { %v779_v61 = vrot.slane %v562_v59, 7  ;;  %v2699_v58 = vsel %vm616_vm3, %v718_v44, %v717_v62  ;;  %v754_v19 = vsel %vm610_vm1, %v753_v17, %v553_v18  ;;  %v766_v28 = vrot.slane %v2691_v42, 7 }
  0xf6   : > { %v2717_v42 = vsel %vm613_vm2, %v755_v52, %v754_v19 }
  0xf9   : > { %1916 = vrot.lane.b32.xlu0 %v1915_v55, %s2260_s28  ;;  %1921 = vrot.lane.b32.xlu2 %v1920_v8, %s2253_s23  ;;  %v741_v8 = vsel %vm610_vm1, %v740_v4, %v549_v30 }
  0xfa   : > { %v743_v11 = vsel %vm613_vm2, %v742_v57, %v741_v8  ;;  %v557_v57 = vld [vmem:[#allocation2 + $0xc] sm:$0x1] }
  0xfb   : > { %v2711_v18 = vsel %vm616_vm3, %v744_v10, %v743_v11 }
 0x119   : > { %v460_v3 = vpop.f32.mrf.mxu1 }
 0x11a   : > { %497 = vst.msk [vmem:[#allocation2 + $0x60] sm:$0xff] %vm269_vm0, %v460_v3 }
 0x121   : > { %v463_v6 = vpop.f32.mrf.mxu1 }
 0x122   : > { %498 = vst.msk [vmem:[#allocation2 + $0x68] sm:$0xff] %vm269_vm0, %v463_v6  ;;  %v728_v6 = vsel %vm610_vm1, %v727_v33, %v545_v45  ;;  %v2708_v45 = vld [vmem:[#allocation2 + $0x3c] sm:$0x1] }
 0x123   : > { %v730_v41 = vsel %vm613_vm2, %v729_v49, %v728_v6 }
 0x127   : > { %v481_v31 = vpop.f32.mrf.mxu3 }
 0x128   : > { %504 = vst.msk [vmem:[#allocation2 + $0x98] sm:$0xff] %vm269_vm0, %v481_v31 }
 0x129   : > { %v466_v46 = vpop.f32.mrf.mxu1  ;;  %v1078_v14 = vld [vmem:[#allocation2 + $0x69] sm:$0x1]  ;;  %v1086_v35 = vld [vmem:[#allocation2 + $0x6b] sm:$0x1]  ;;  %v1082_v16 = vld [vmem:[#allocation2 + $0x6a] sm:$0x1] }
 0x12a   : > { %499 = vst.msk [vmem:[#allocation2 + $0x70] sm:$0xff] %vm269_vm0, %v466_v46 }
 0x12f   : > { %v484_v39 = vpop.f32.mrf.mxu3  ;;  %v1080_v56 = vld [vmem:[#allocation2 + $0x99] sm:$0x1]  ;;  %v1088_v40 = vld [vmem:[#allocation2 + $0x9b] sm:$0x1]  ;;  %v1100_v11 = vld [vmem:[#allocation2 + $0x9e] sm:$0x1] }
 0x130   : > { %505 = vst.msk [vmem:[#allocation2 + $0xa0] sm:$0xff] %vm269_vm0, %v484_v39  ;;  %v1259_v21 = vrot.slane %v1080_v56, 6  ;;  %v1285_v5 = vrot.slane %v1088_v40, 6  ;;  %v2714_v56 = vsel %vm616_vm3, %v731_v50, %v730_v41 }
 0x131   : > { %v469_v47 = vpop.f32.mrf.mxu1 }
 0x132   : > { %500 = vst.msk [vmem:[#allocation2 + $0x78] sm:$0xff] %vm269_vm0, %v469_v47  ;;  %v1084_v47 = vld [vmem:[#allocation2 + $0x9a] sm:$0x1] }
 0x133   : > { %v1272_v37 = vrot.slane %v1084_v47, 6  ;;  %v564_v47 = vld [vmem:[#allocation2 + $0x55] sm:$0x1] }
 0x137   : > { %v487_v48 = vpop.f32.mrf.mxu3 }
 0x138   : > { %506 = vst.msk [vmem:[#allocation2 + $0xa8] sm:$0xff] %vm269_vm0, %v487_v48 }
 0x139   : > { %v472_v25 = vpop.f32.mrf.mxu1 }
 0x13a   : > { %501 = vst.msk [vmem:[#allocation2 + $0x80] sm:$0xff] %vm269_vm0, %v472_v25  ;;  %v781_v25 = vrot.slane %v2687_v36, 6 }
 0x13f   : > { %v490_v63 = vpop.f32.mrf.mxu3 }
 0x140   : > { %507 = vst.msk [vmem:[#allocation2 + $0xb0] sm:$0xff] %vm269_vm0, %v490_v63 }
 0x141   : > { %v475_v60 = vpop.f32.mrf.mxu1  ;;  %v1079_v55 = vld [vmem:[#allocation2 + $0x81] sm:$0x1]  ;;  %v1087_v3 = vld [vmem:[#allocation2 + $0x83] sm:$0x1]  ;;  %v1083_v31 = vld [vmem:[#allocation2 + $0x82] sm:$0x1] }
 0x142   : > { %502 = vst.msk [vmem:[#allocation2 + $0x88] sm:$0xff] %vm269_vm0, %v475_v60  ;;  %v1257_v46 = vrot.slane %v1079_v55, 7  ;;  %v1283_v39 = vrot.slane %v1087_v3, 7  ;;  %v1270_v43 = vrot.slane %v1083_v31, 7  ;;  %v1091_v48 = vld [vmem:[#allocation2 + $0x84] sm:$0x1]  ;;  %v780_v60 = vsel %vm610_vm1, %v779_v61, %v561_v53 }
 0x143   : > { %v1099_v26 = vld [vmem:[#allocation2 + $0x86] sm:$0x1]  ;;  %v1296_v33 = vrot.slane %v1091_v48, 7  ;;  %v1095_v49 = vld [vmem:[#allocation2 + $0x85] sm:$0x1] }
 0x144   : > { %v1258_v30 = vsel %vm610_vm1, %v1257_v46, %v1078_v14  ;;  %v1284_v44 = vsel %vm610_vm1, %v1283_v39, %v1086_v35  ;;  %v1271_v4 = vsel %vm610_vm1, %v1270_v43, %v1082_v16  ;;  %v1092_v3 = vld [vmem:[#allocation2 + $0x9c] sm:$0x1]  ;;  %v1322_v6 = vrot.slane %v1099_v26, 7  ;;  %v560_v43 = vld [vmem:[#allocation2 + $0x54] sm:$0x1] }
 0x145   : > { %v1260_v10 = vsel %vm613_vm2, %v1259_v21, %v1258_v30  ;;  %v1286_v46 = vsel %vm613_vm2, %v1285_v5, %v1284_v44  ;;  %v1273_v50 = vsel %vm613_vm2, %v1272_v37, %v1271_v4  ;;  %v1309_v48 = vrot.slane %v1095_v49, 7  ;;  %v1090_v5 = vld [vmem:[#allocation2 + $0x6c] sm:$0x1]  ;;  %v1098_v37 = vld [vmem:[#allocation2 + $0x6e] sm:$0x1] }
 0x146   : > { %v768_v35 = vrot.slane %v2708_v45, 6  ;;  %v767_v26 = vsel %vm610_vm1, %v766_v28, %v557_v57  ;;  %v1096_v30 = vld [vmem:[#allocation2 + $0x9d] sm:$0x1]  ;;  %v1297_v44 = vsel %vm610_vm1, %v1296_v33, %v1090_v5  ;;  %v1323_v45 = vsel %vm610_vm1, %v1322_v6, %v1098_v37  ;;  %v1103_v33 = vld [vmem:[#allocation2 + $0x87] sm:$0x1] }
 0x147   : > { %v493_v63 = vpop.f32.mrf.mxu3  ;;  %v1081_v59 = vld [vmem:[#allocation2 + $0xb1] sm:$0x1]  ;;  %v1089_v17 = vld [vmem:[#allocation2 + $0xb3] sm:$0x1]  ;;  %v1085_v40 = vld [vmem:[#allocation2 + $0xb2] sm:$0x1] }
 0x148   : > { %508 = vst.msk [vmem:[#allocation2 + $0xb8] sm:$0xff] %vm269_vm0, %v493_v63  ;;  %v1261_v62 = vrot.slane %v1081_v59, 5  ;;  %v1287_v55 = vrot.slane %v1089_v17, 5  ;;  %v1274_v8 = vrot.slane %v1085_v40, 5  ;;  %v1093_v39 = vld [vmem:[#allocation2 + $0xb4] sm:$0x1]  ;;  %v2744_v17 = vpop.permute.xlu2 %1013 }
 0x149   : > { %v478_v31 = vpop.f32.mrf.mxu1  ;;  %v1101_v52 = vld [vmem:[#allocation2 + $0xb6] sm:$0x1]  ;;  %v1097_v41 = vld [vmem:[#allocation2 + $0xb5] sm:$0x1]  ;;  %v1300_v4 = vrot.slane %v1093_v39, 5  ;;  %v1298_v40 = vrot.slane %v1092_v3, 6 }
 0x14a   : > { %503 = vst.msk [vmem:[#allocation2 + $0x90] sm:$0xff] %vm269_vm0, %v478_v31  ;;  %v2726_v53 = vsel %vm616_vm3, %v1261_v62, %v1260_v10  ;;  %v2729_v61 = vsel %vm616_vm3, %v1287_v55, %v1286_v46  ;;  %v2732_v14 = vsel %vm616_vm3, %v1274_v8, %v1273_v50  ;;  %v1326_v49 = vrot.slane %v1101_v52, 5  ;;  %v1094_v63 = vld [vmem:[#allocation2 + $0x6d] sm:$0x1]  ;;  %v566_v59 = vld [vmem:[#allocation2 + $0x26] sm:$0x1] }
 0x14b   : > { %v1925_v16 = vpack.i.bf16 %v2726_v53, %v2699_v58  ;;  %v1935_v19 = vpack.i.bf16 %v2729_v61, %v2711_v18  ;;  %v1930_v21 = vpack.i.bf16 %v2732_v14, %v2714_v56  ;;  %v1324_v62 = vrot.slane %v1100_v11, 6  ;;  %v1075_v10 = vld [vmem:[#allocation2 + $0x80] sm:$0x1]  ;;  %v1105_v11 = vld [vmem:[#allocation2 + $0xb7] sm:$0x1] }
 0x14c   : > { %v1310_v28 = vsel %vm610_vm1, %v1309_v48, %v1094_v63  ;;  %v1313_v57 = vrot.slane %v1097_v41, 5  ;;  %v782_v55 = vsel %vm613_vm2, %v781_v25, %v780_v60  ;;  %v783_v8 = vrot.slane %v564_v47, 5  ;;  %v567_v25 = vld [vmem:[#allocation2 + $0x3e] sm:$0x1]  ;;  %v1077_v5 = vld [vmem:[#allocation2 + $0xb0] sm:$0x1] }
 0x14d   : > { %1926 = vrot.lane.b32.xlu1 %v1925_v16, %s2261_s29  ;;  %1936 = vrot.lane.b32.xlu0 %v1935_v19, %s2262_s5  ;;  %v770_v6 = vrot.slane %v560_v43, 5  ;;  %v1311_v31 = vrot.slane %v1096_v30, 6  ;;  %v1299_v46 = vsel %vm613_vm2, %v1298_v40, %v1297_v44  ;;  %v1325_v3 = vsel %vm613_vm2, %v1324_v62, %v1323_v45  ;;  %v565_v43 = vld [vmem:[#allocation2 + $0xe] sm:$0x1]  ;;  %v568_v19 = vld [vmem:[#allocation2 + $0x56] sm:$0x1] }
 0x14e   : > { %1931 = vrot.lane.b32.xlu2 %v1930_v21, %s2263_s6  ;;  %v769_v50 = vsel %vm613_vm2, %v768_v35, %v767_v26  ;;  %v792_v39 = vrot.slane %v566_v59, 7  ;;  %v2757_v52 = vsel %vm616_vm3, %v1300_v4, %v1299_v46  ;;  %v2760_v48 = vsel %vm616_vm3, %v1326_v49, %v1325_v3  ;;  %v1104_v21 = vld [vmem:[#allocation2 + $0x9f] sm:$0x1]  ;;  %v1102_v4 = vld [vmem:[#allocation2 + $0x6f] sm:$0x1] }
 0x14f   : > { %v1312_v36 = vsel %vm613_vm2, %v1311_v31, %v1310_v28  ;;  %v1335_v60 = vrot.slane %v1103_v33, 7  ;;  %v1244_v41 = vrot.slane %v1075_v10, 7  ;;  %v758_v35 = vsel %vm616_vm3, %v757_v15, %v2717_v42  ;;  %v1076_v45 = vld [vmem:[#allocation2 + $0x98] sm:$0x1]  ;;  %v1074_v63 = vld [vmem:[#allocation2 + $0x68] sm:$0x1] }
 0x150   : > { %v2764_v47 = vsel %vm616_vm3, %v1313_v57, %v1312_v36  ;;  %v2771_v16 = vsel %vm616_vm3, %v783_v8, %v782_v55  ;;  %v1940_v37 = vpack.i.bf16 %v2757_v52, %v758_v35  ;;  %v2777_v30 = vsel %vm616_vm3, %v770_v6, %v769_v50  ;;  %v1127_v28 = vld [vmem:[#allocation2 + $0x8d] sm:$0x1]  ;;  %v1897_v55 = vpop.permute.xlu2 %1896  ;;  %v1129_v46 = vld [vmem:[#allocation2 + $0xbd] sm:$0x1] }
 0x151   : > { %v1950_v26 = vpack.i.bf16 %v2760_v48, %v2771_v16  ;;  %v794_v44 = vrot.slane %v567_v25, 6  ;;  %v1945_v9 = vpack.i.bf16 %v2764_v47, %v2777_v30  ;;  %v793_v15 = vsel %vm610_vm1, %v792_v39, %v565_v43  ;;  %v1128_v25 = vld [vmem:[#allocation2 + $0xa5] sm:$0x1] }
 0x152   : > { %v1336_v42 = vsel %vm610_vm1, %v1335_v60, %v1102_v4  ;;  %v1339_v49 = vrot.slane %v1105_v11, 5  ;;  %v1337_v59 = vrot.slane %v1104_v21, 6  ;;  %v1245_v40 = vsel %vm610_vm1, %v1244_v41, %v1074_v63  ;;  %v1112_v63 = vld [vmem:[#allocation2 + $0xa1] sm:$0x1] }
 0x153   : > { %v1248_v62 = vrot.slane %v1077_v5, 5  ;;  %v796_v57 = vrot.slane %v568_v19, 5  ;;  %v1246_v33 = vrot.slane %v1076_v45, 6  ;;  %v795_v8 = vsel %vm613_vm2, %v794_v44, %v793_v15  ;;  %v1126_v19 = vld [vmem:[#allocation2 + $0x75] sm:$0x1] }
 0x154   : > { %v1338_v6 = vsel %vm613_vm2, %v1337_v59, %v1336_v42  ;;  %v1426_v3 = vrot.slane %v1127_v28, 7  ;;  %v1899_v39 = vunpack.i.h.bf16 %v1897_v55  ;;  %v1898_v60 = vunpack.i.l.bf16 %v1897_v55  ;;  %v1123_v45 = vld [vmem:[#allocation2 + $0x8c] sm:$0x1]  ;;  %v1131_v59 = vld [vmem:[#allocation2 + $0x8e] sm:$0x1] }
 0x155   : > { %1941 = vrot.lane.b32.xlu1 %v1940_v37, %s2264_s24  ;;  %1951 = vrot.lane.b32.xlu0 %v1950_v26, %s2265_s12  ;;  %v2790_v31 = vsel %vm616_vm3, %v1339_v49, %v1338_v6  ;;  %v1247_v10 = vsel %vm613_vm2, %v1246_v33, %v1245_v40  ;;  %v2797_v36 = vsel %vm616_vm3, %v796_v57, %v795_v8  ;;  %v1430_v21 = vrot.slane %v1129_v46, 5  ;;  %v1113_v46 = vld [vmem:[#allocation2 + $0xb9] sm:$0x1] }
 0x156   : > { %1946 = vrot.lane.b32.xlu2 %v1945_v9, %s2266_s14  ;;  %v2794_v50 = vsel %vm616_vm3, %v1248_v62, %v1247_v10  ;;  %v1955_v11 = vpack.i.bf16 %v2790_v31, %v2797_v36  ;;  %v1970_v41 = vpack.i.bf16 %v758_v35, %v2732_v14  ;;  %v1427_v4 = vsel %vm610_vm1, %v1426_v3, %v1126_v19  ;;  %v1111_v14 = vld [vmem:[#allocation2 + $0x89] sm:$0x1] }
 0x157   : > { %v1960_v44 = vpack.i.bf16 %v2714_v56, %v2794_v50  ;;  %v1428_v42 = vrot.slane %v1128_v25, 6  ;;  %v1124_v56 = vld [vmem:[#allocation2 + $0xa4] sm:$0x1]  ;;  %v1413_v57 = vrot.slane %v1123_v45, 7  ;;  %v1374_v8 = vrot.slane %v1111_v14, 7 }
 0x158   : > { %v2820_v6 = vpop.permute.xlu2 %1911  ;;  %v1415_v10 = vrot.slane %v1124_v56, 6  ;;  %v1376_v3 = vrot.slane %v1112_v63, 6  ;;  %v1439_v25 = vrot.slane %v1131_v59, 7  ;;  %v1119_v59 = vld [vmem:[#allocation2 + $0x8b] sm:$0x1] }
 0x159   : > { %v1429_v28 = vsel %vm613_vm2, %v1428_v42, %v1427_v4  ;;  %v1135_v42 = vld [vmem:[#allocation2 + $0x8f] sm:$0x1] }
 0x15b   : > { %v1887_v43 = vpop.permute.xlu0 %1886 }
 0x15c   : > { %v1889_v5 = vunpack.i.h.bf16 %v1887_v43  ;;  %v1888_v37 = vunpack.i.l.bf16 %v1887_v43  ;;  %v1892_v26 = vpop.permute.xlu1 %1891  ;;  %v1913_v43 = vunpack.i.l.bf16 %v2820_v6 }
 0x15d   : > { %v1894_v9 = vunpack.i.h.bf16 %v1892_v26  ;;  %v1893_v15 = vunpack.i.l.bf16 %v1892_v26  ;;  %1956 = vrot.lane.b32.xlu1 %v1955_v11, %s2252_s1  ;;  %1971 = vrot.lane.b32.xlu0 %v1970_v41, %s2262_s5  ;;  %v1122_v11 = vld [vmem:[#allocation2 + $0x74] sm:$0x1]  ;;  %v1110_v26 = vld [vmem:[#allocation2 + $0x71] sm:$0x1] }
 0x15e   : > { %v945_v35 = vsel %vm814_vm4, %v2533_v12, %v1889_v5  ;;  %v815_v49 = vsel %vm814_vm4, %v2656_v13, %v1888_v37  ;;  %1961 = vrot.lane.b32.xlu2 %v1960_v44, %s2261_s29  ;;  %v2818_v12 = vsel %vm616_vm3, %v1430_v21, %v1429_v28  ;;  %v1125_v13 = vld [vmem:[#allocation2 + $0xbc] sm:$0x1]  ;;  %v1975_v21 = vpack.i.bf16 %v2777_v30, %v2729_v61  ;;  %v1132_v44 = vld [vmem:[#allocation2 + $0xa6] sm:$0x1]  ;;  %v1115_v30 = vld [vmem:[#allocation2 + $0x8a] sm:$0x1] }
 0x15f   : > { %v816_v40 = vsel %vm269_vm0, %v815_v49, %v1893_v15  ;;  %v946_v62 = vsel %vm269_vm0, %v945_v35, %v1894_v9  ;;  %v1985_v19 = vpack.i.bf16 %v2818_v12, %v2626_v54  ;;  %v1414_v5 = vsel %vm610_vm1, %v1413_v57, %v1122_v11  ;;  %v1130_v15 = vld [vmem:[#allocation2 + $0x76] sm:$0x1] }
 0x160   : > { %v818_v33 = vsel %vm817_vm5, %v816_v40, %v1898_v60  ;;  %v947_v55 = vsel %vm817_vm5, %v946_v62, %v1899_v39  ;;  %v1965_v60 = vpack.i.bf16 %v2711_v18, %v2726_v53  ;;  %v1133_v39 = vld [vmem:[#allocation2 + $0xbe] sm:$0x1]  ;;  %v1417_v37 = vrot.slane %v1125_v13, 5 }
 0x161   : > { %v1375_v18 = vsel %vm610_vm1, %v1374_v8, %v1110_v26  ;;  %v1378_v53 = vrot.slane %v1113_v46, 5  ;;  %v1440_v54 = vsel %vm610_vm1, %v1439_v25, %v1130_v15  ;;  %v1443_v61 = vrot.slane %v1133_v39, 5  ;;  %v1137_v8 = vld [vmem:[#allocation2 + $0xbf] sm:$0x1]  ;;  %v1134_v25 = vld [vmem:[#allocation2 + $0x77] sm:$0x1] }
 0x162   : > { %v1416_v56 = vsel %vm613_vm2, %v1415_v10, %v1414_v5  ;;  %v1441_v63 = vrot.slane %v1132_v44, 6  ;;  %v1377_v28 = vsel %vm613_vm2, %v1376_v3, %v1375_v18  ;;  %v1452_v57 = vrot.slane %v1135_v42, 7  ;;  %v1136_v39 = vld [vmem:[#allocation2 + $0xa7] sm:$0x1]  ;;  %v1121_v3 = vld [vmem:[#allocation2 + $0xbb] sm:$0x1] }
 0x163   : > { %v1902_v41 = vpop.permute.xlu0 %1901  ;;  %v2845_v62 = vsel %vm616_vm3, %v1417_v37, %v1416_v56  ;;  %v1387_v10 = vrot.slane %v1115_v30, 7  ;;  %v1400_v11 = vrot.slane %v1119_v59, 7  ;;  %v1114_v5 = vld [vmem:[#allocation2 + $0x72] sm:$0x1]  ;;  %v1120_v37 = vld [vmem:[#allocation2 + $0xa3] sm:$0x1]  ;;  %v2075_v30 = vpack.i.bf16 %v2771_v16, %v2757_v52 }
 0x164   : > { %v1904_v4 = vunpack.i.h.bf16 %v1902_v41  ;;  %v1903_v45 = vunpack.i.l.bf16 %v1902_v41  ;;  %v2830_v9 = vpop.permute.xlu1 %1906  ;;  %v1116_v41 = vld [vmem:[#allocation2 + $0xa2] sm:$0x1]  ;;  %v1453_v44 = vsel %vm610_vm1, %v1452_v57, %v1134_v25  ;;  %v1118_v18 = vld [vmem:[#allocation2 + $0x73] sm:$0x1]  ;;  %v1404_v15 = vrot.slane %v1121_v3, 5 }
 0x165   : > { %v1908_v14 = vunpack.i.l.bf16 %v2830_v9  ;;  %1966 = vrot.lane.b32.xlu1 %v1965_v60, %s2263_s6  ;;  %1986 = vrot.lane.b32.xlu0 %v1985_v19, %s2258_s13  ;;  %v1117_v60 = vld [vmem:[#allocation2 + $0xba] sm:$0x1]  ;;  %v1402_v42 = vrot.slane %v1120_v37, 6  ;;  %v1109_v3 = vld [vmem:[#allocation2 + $0xb8] sm:$0x1] }
 0x166   : > { %v820_v35 = vsel %vm819_vm6, %v818_v33, %v1903_v45  ;;  %v2839_v49 = vsel %vm819_vm6, %v947_v55, %v1904_v4  ;;  %1976 = vrot.lane.b32.xlu2 %v1975_v21, %s2264_s24  ;;  %v2852_v33 = vsel %vm616_vm3, %v1378_v53, %v1377_v28  ;;  %v1442_v55 = vsel %vm613_vm2, %v1441_v63, %v1440_v54  ;;  %v1059_v37 = vld [vmem:[#allocation2 + $0x7c] sm:$0x1] }
 0x167   : > { %v822_v40 = vsel %vm821_vm7, %v820_v35, %v1908_v14  ;;  %v2856_v46 = vsel %vm616_vm3, %v1443_v61, %v1442_v55  ;;  %v2000_v19 = vpack.i.bf16 %v2559_v34, %v2852_v33  ;;  %v1456_v21 = vrot.slane %v1137_v8, 5  ;;  %v1043_v14 = vld [vmem:[#allocation2 + $0x78] sm:$0x1]  ;;  %v1044_v61 = vld [vmem:[#allocation2 + $0x90] sm:$0x1] }
 0x168   : > { %v2849_v13 = vsel %vm823_vm8, %v822_v40, %v1913_v43  ;;  %v1980_v43 = vpack.i.bf16 %v2845_v62, %v2617_v38  ;;  %v1990_v26 = vpack.i.bf16 %v2856_v46, %v2612_v23  ;;  %v1388_v4 = vsel %vm610_vm1, %v1387_v10, %v1114_v5  ;;  %v1107_v40 = vld [vmem:[#allocation2 + $0x88] sm:$0x1]  ;;  %v1052_v5 = vld [vmem:[#allocation2 + $0x92] sm:$0x1] }
 0x169   : > { %v1391_v45 = vrot.slane %v1117_v60, 5  ;;  %v1454_v38 = vrot.slane %v1136_v39, 6  ;;  %v1389_v53 = vrot.slane %v1116_v41, 6  ;;  %v1401_v34 = vsel %vm610_vm1, %v1400_v11, %v1118_v18  ;;  %v1042_v39 = vld [vmem:[#allocation2 + $0x60] sm:$0x1] }
 0x16a   : > { %v2090_v35 = vpack.i.bf16 %v2797_v36, %v2764_v47  ;;  %v1403_v59 = vsel %vm613_vm2, %v1402_v42, %v1401_v34  ;;  %v1142_v57 = vrot.slane %v1043_v14, 7  ;;  %v1144_v55 = vrot.slane %v1044_v61, 6  ;;  %v1045_v41 = vld [vmem:[#allocation2 + $0xa8] sm:$0x1]  ;;  %v1056_v18 = vld [vmem:[#allocation2 + $0x93] sm:$0x1] }
 0x16b   : > { %v1455_v23 = vsel %vm613_vm2, %v1454_v38, %v1453_v44  ;;  %v1390_v54 = vsel %vm613_vm2, %v1389_v53, %v1388_v4  ;;  %v2882_v28 = vsel %vm616_vm3, %v1404_v15, %v1403_v59  ;;  %v1909_v8 = vunpack.i.h.bf16 %v2830_v9  ;;  %v1060_v38 = vld [vmem:[#allocation2 + $0x94] sm:$0x1] }
 0x16c   : > { %v1457_v56 = vsel %vm616_vm3, %v1456_v21, %v1455_v23  ;;  %v2878_v63 = vsel %vm616_vm3, %v1391_v45, %v1390_v54  ;;  %v1363_v60 = vrot.slane %v1107_v40, 7  ;;  %v2015_v11 = vpack.i.bf16 %v2606_v20, %v2882_v28  ;;  %v1051_v21 = vld [vmem:[#allocation2 + $0x7a] sm:$0x1]  ;;  %v1055_v20 = vld [vmem:[#allocation2 + $0x7b] sm:$0x1] }
 0x16d   : > { %1981 = vrot.lane.b32.xlu1 %v1980_v43, %s2254_s25  ;;  %2001 = vrot.lane.b32.xlu0 %v2000_v19, %s2255_s30  ;;  %v1995_v10 = vpack.i.bf16 %v1457_v56, %v2650_v0  ;;  %v2010_v25 = vpack.i.bf16 %v2553_v29, %v2878_v63  ;;  %v1106_v43 = vld [vmem:[#allocation2 + $0x70] sm:$0x1]  ;;  %v1108_v19 = vld [vmem:[#allocation2 + $0xa0] sm:$0x1]  ;;  %v1143_v9 = vsel %vm610_vm1, %v1142_v57, %v1042_v39  ;;  %v1914_v0 = vunpack.i.h.bf16 %v2820_v6  ;;  %v1058_v39 = vld [vmem:[#allocation2 + $0x64] sm:$0x1] }
 0x16e   : > { %1991 = vrot.lane.b32.xlu2 %v1990_v26, %s2259_s27  ;;  %v1145_v29 = vsel %vm613_vm2, %v1144_v55, %v1143_v9  ;;  %v949_v26 = vsel %vm821_vm7, %v2839_v49, %v1909_v8  ;;  %v1146_v44 = vrot.slane %v1045_v41, 5  ;;  %v1364_v4 = vsel %vm610_vm1, %v1363_v60, %v1106_v43  ;;  %v1050_v55 = vld [vmem:[#allocation2 + $0x62] sm:$0x1]  ;;  %v1053_v8 = vld [vmem:[#allocation2 + $0xaa] sm:$0x1] }
 0x16f   : > { %v1367_v45 = vrot.slane %v1109_v3, 5  ;;  %v1365_v53 = vrot.slane %v1108_v19, 6  ;;  %v1166_v34 = vrot.slane %v1051_v21, 7  ;;  %v1168_v15 = vrot.slane %v1052_v5, 6  ;;  %v1061_v41 = vld [vmem:[#allocation2 + $0xac] sm:$0x1] }
 0x170   : > { %v2900_v6 = vsel %vm616_vm3, %v1146_v44, %v1145_v29  ;;  %v1179_v42 = vrot.slane %v1055_v20, 7  ;;  %v1192_v14 = vrot.slane %v1059_v37, 7  ;;  %v1181_v54 = vrot.slane %v1056_v18, 6  ;;  %v1048_v3 = vld [vmem:[#allocation2 + $0x91] sm:$0x1] }
 0x171   : > { %v1366_v23 = vsel %vm613_vm2, %v1365_v53, %v1364_v4  ;;  %v1194_v61 = vrot.slane %v1060_v38, 6  ;;  %v2904_v49 = vsel %vm823_vm8, %v949_v26, %v1914_v0  ;;  %v2005_v59 = vpack.i.bf16 %v1457_v56, %v2699_v58  ;;  %v1047_v56 = vld [vmem:[#allocation2 + $0x79] sm:$0x1]  ;;  %v1063_v21 = vld [vmem:[#allocation2 + $0x7d] sm:$0x1] }
 0x172   : > { %v2025_v40 = vpack.i.bf16 %v2603_v51, %v2818_v12  ;;  %v2910_v57 = vsel %vm616_vm3, %v1367_v45, %v1366_v23  ;;  %v1167_v60 = vsel %vm610_vm1, %v1166_v34, %v1050_v55  ;;  %v1193_v12 = vsel %vm610_vm1, %v1192_v14, %v1058_v39  ;;  %v1067_v0 = vld [vmem:[#allocation2 + $0x7e] sm:$0x1]  ;;  %v1064_v20 = vld [vmem:[#allocation2 + $0x95] sm:$0x1]  ;;  %v1068_v37 = vld [vmem:[#allocation2 + $0x96] sm:$0x1] }
 0x173   : > { %v1169_v51 = vsel %vm613_vm2, %v1168_v15, %v1167_v60  ;;  %v1170_v43 = vrot.slane %v1053_v8, 5  ;;  %v1195_v9 = vsel %vm613_vm2, %v1194_v61, %v1193_v12  ;;  %v1196_v5 = vrot.slane %v1061_v41, 5  ;;  %v1046_v23 = vld [vmem:[#allocation2 + $0x61] sm:$0x1]  ;;  %v1062_v61 = vld [vmem:[#allocation2 + $0x65] sm:$0x1] }
 0x174   : > { %v1153_v44 = vrot.slane %v1047_v56, 7  ;;  %v1155_v4 = vrot.slane %v1048_v3, 6  ;;  %v1205_v38 = vrot.slane %v1063_v21, 7  ;;  %v1218_v53 = vrot.slane %v1067_v0, 7  ;;  %v1065_v55 = vld [vmem:[#allocation2 + $0xad] sm:$0x1] }
 0x175   : > { %1996 = vrot.lane.b32.xlu1 %v1995_v10, %s2257_s8  ;;  %2011 = vrot.lane.b32.xlu0 %v2010_v25, %s2256_s7  ;;  %v1054_v10 = vld [vmem:[#allocation2 + $0x63] sm:$0x1]  ;;  %v2040_v25 = vpack.i.bf16 %v2910_v57, %v2900_v6  ;;  %v1171_v26 = vsel %vm616_vm3, %v1170_v43, %v1169_v51  ;;  %v1197_v18 = vsel %vm616_vm3, %v1196_v5, %v1195_v9  ;;  %v1207_v34 = vrot.slane %v1064_v20, 6  ;;  %v1066_v8 = vld [vmem:[#allocation2 + $0x66] sm:$0x1] }
 0x176   : > { %2016 = vrot.lane.b32.xlu2 %v2015_v11, %s2254_s25  ;;  %v1057_v11 = vld [vmem:[#allocation2 + $0xab] sm:$0x1]  ;;  %v1180_v58 = vsel %vm610_vm1, %v1179_v42, %v1054_v10  ;;  %v1220_v15 = vrot.slane %v1068_v37, 6  ;;  %v2020_v42 = vpack.i.bf16 %v2621_v22, %v2845_v62  ;;  %v2030_v14 = vpack.i.bf16 %v1171_v26, %v2583_v27  ;;  %v1069_v10 = vld [vmem:[#allocation2 + $0xae] sm:$0x1] }
 0x177   : > { %v1182_v19 = vsel %vm613_vm2, %v1181_v54, %v1180_v58  ;;  %v1183_v29 = vrot.slane %v1057_v11, 5  ;;  %v1049_v54 = vld [vmem:[#allocation2 + $0xa9] sm:$0x1]  ;;  %v1206_v60 = vsel %vm610_vm1, %v1205_v38, %v1062_v61  ;;  %v1219_v22 = vsel %vm610_vm1, %v1218_v53, %v1066_v8  ;;  %v1072_v9 = vld [vmem:[#allocation2 + $0x97] sm:$0x1] }
 0x178   : > { %v1157_v27 = vrot.slane %v1049_v54, 5  ;;  %v1208_v62 = vsel %vm613_vm2, %v1207_v34, %v1206_v60  ;;  %v1221_v11 = vsel %vm613_vm2, %v1220_v15, %v1219_v22  ;;  %v1209_v39 = vrot.slane %v1065_v55, 5  ;;  %v1070_v20 = vld [vmem:[#allocation2 + $0x67] sm:$0x1]  ;;  %v1073_v37 = vld [vmem:[#allocation2 + $0xaf] sm:$0x1] }
 0x179   : > { %v1184_v45 = vsel %vm616_vm3, %v1183_v29, %v1182_v19  ;;  %v1222_v41 = vrot.slane %v1069_v10, 5  ;;  %v1071_v19 = vld [vmem:[#allocation2 + $0x7f] sm:$0x1]  ;;  %v1233_v0 = vrot.slane %v1072_v9, 6  ;;  %v2050_v29 = vpack.i.bf16 %v2882_v28, %v1171_v26 }
 0x17a   : > { %v1210_v58 = vsel %vm616_vm3, %v1209_v39, %v1208_v62  ;;  %v2035_v56 = vpack.i.bf16 %v1184_v45, %v2573_v7  ;;  %v1231_v21 = vrot.slane %v1071_v19, 7  ;;  %v2080_v7 = vpack.i.bf16 %v2653_v1, %v2856_v46  ;;  %v2963_v1 = vpop.permute.xlu2 %1921 }
 0x17b   : > { %v1223_v12 = vsel %vm616_vm3, %v1222_v41, %v1221_v11  ;;  %v2060_v5 = vpack.i.bf16 %v1197_v18, %v1210_v58  ;;  %v2095_v46 = vpack.i.bf16 %v2659_v2, %v2760_v48 }
 0x17c   : > { %v2065_v43 = vpack.i.bf16 %v1210_v58, %v1223_v12 }
 0x17d   : > { %2006 = vrot.lane.b32.xlu1 %v2005_v59, %s2260_s28  ;;  %2026 = vrot.lane.b32.xlu0 %v2025_v40, %s2259_s27  ;;  %v2055_v59 = vpack.i.bf16 %v1184_v45, %v1197_v18  ;;  %v1154_v40 = vsel %vm610_vm1, %v1153_v44, %v1046_v23  ;;  %v2980_v18 = vpop.permute.xlu0 %1916 }
 0x17e   : > { %2041 = vrot.lane.b32.xlu2 %v2040_v25, %s2253_s23  ;;  %v1156_v25 = vsel %vm613_vm2, %v1155_v4, %v1154_v40  ;;  %v1235_v4 = vrot.slane %v1073_v37, 5  ;;  %v1918_v52 = vunpack.i.l.bf16 %v2980_v18 }
 0x17f   : > { %v2939_v51 = vsel %vm616_vm3, %v1157_v27, %v1156_v25 }
 0x180   : > { %v2045_v3 = vpack.i.bf16 %v2878_v63, %v2939_v51  ;;  %v1232_v63 = vsel %vm610_vm1, %v1231_v21, %v1070_v20  ;;  %v826_v48 = vsel %vm825_vm9, %v2849_v13, %v1918_v52  ;;  %vm839_vm1 = vcmask 916480  }
 0x181   : > { %v1234_v44 = vsel %vm613_vm2, %v1233_v0, %v1232_v63  ;;  %v1035_v0 = vsel %vm814_vm4, %v2744_v17, %v2556_v32  ;;  %vm1570_vm2 = vcmask 1043456  }
 0x182   : > { %v1236_v45 = vsel %vm616_vm3, %v1235_v4, %v1234_v44  ;;  %v1924_v44 = vunpack.i.h.bf16 %v2963_v1  ;;  %vm841_vm3 = vcmask 982016  }
 0x183   : > { %v2070_v28 = vpack.i.bf16 %v1223_v12, %v1236_v45  ;;  %v2085_v26 = vpack.i.bf16 %v1236_v45, %v2794_v50  ;;  %v1919_v45 = vunpack.i.h.bf16 %v2980_v18 }
 0x184   : > { %v998_v52 = vsel %vm814_vm4, %v1924_v44, %v2578_v24 }
 0x185   : > { %2021 = vrot.lane.b32.xlu1 %v2020_v42, %s2258_s13  ;;  %2031 = vrot.lane.b32.xlu0 %v2030_v14, %s2255_s30  ;;  %v951_v18 = vsel %vm825_vm9, %v2904_v49, %v1919_v45 }
 0x186   : > { %2056 = vrot.lane.b32.xlu2 %v2055_v59, %s2254_s25 }
 0x18d   : > { %2036 = vrot.lane.b32.xlu1 %v2035_v56, %s2256_s7  ;;  %2046 = vrot.lane.b32.xlu0 %v2045_v3, %s2255_s30  ;;  %s1754_s30 = sshll.u32 %s2392_s10, 3 }
 0x18e   : > { %2066 = vrot.lane.b32.xlu2 %v2065_v43, %s2259_s27 }
 0x195   : > { %2051 = vrot.lane.b32.xlu1 %v2050_v29, %s2256_s7  ;;  %2061 = vrot.lane.b32.xlu0 %v2060_v5, %s2258_s13  ;;  %s1786_s7 = sshll.u32 %s2239_s18, 3  ;;  %s1634_s18 = scalar_lea.sflag [#allocation5], %s2392_s10 }
 0x196   : > { %2081 = vrot.lane.b32.xlu2 %v2080_v7, %s2257_s8  ;;  %s1647_s27 = scalar_lea.hbm %s3218_s4, %s1786_s7 }
 0x197   : > { %s1651_s5 = sshll.u32 %s1647_s27, 4  ;;  %s1652_s5 = int_to_ptr.hbm [resolvable:$true] %s1651_s5 }
 0x198   : > { %s2175_s6 = sshra.s32 %s1652_s5, 4  ;;  %s2176_s6 = int_to_ptr.hbm [resolvable:$true] %s2175_s6 }
 0x199   : > { %s2177_s24 = scalar_lea.hbm %s2176_s6, 8  ;;  %p2182_p8 = scmp.lt.s32.totalorder %s2176_s6, %s3218_s4 }
 0x19a   : > { %p2178_p1 = scmp.ne.s32.totalorder %s2176_s6, %s2177_s24  ;;  %p2183_p12 = scmp.lt.s32.totalorder %s2181_s22, %s2177_s24 }
 0x19c   : > { %p2179_p2 = pnand %p2178_p1, %p2371_p5  ;;  %p2184_p13 = por %p2183_p12, %p2182_p8 }
 0x19d   : > { %2071 = vrot.lane.b32.xlu1 %v2070_v28, %s2257_s8  ;;  %2086 = vrot.lane.b32.xlu0 %v2085_v26, %s2260_s28  ;;  %s252_s28 = scalar_lea.vmem [#allocation8], %s1754_s30 }
 0x19e   : > { %1341 = vrot.lane.b32.xlu2 %v2790_v31, %s2253_s23  ;;  %s1649_s29 = sshll.u32 %s252_s28, 4  ;;  %p2180_p4 = pneg %p2179_p2  ;;  %s1650_s29 = int_to_ptr.vmem [resolvable:$true] %s1649_s29 }
 0x1a0   : > { %p2185_p0 = pnand %p2184_p13, %p2180_p4 }
 0x1a5   : > { %2076 = vrot.lane.b32.xlu1 %v2075_v30, %s2266_s14  ;;  %2091 = vrot.lane.b32.xlu0 %v2090_v35, %s2265_s12 }
 0x1a8   : > { %v2973_v50 = vpop.permute.xlu2 %1931 }
 0x1a9   : > { %v1933_v30 = vunpack.i.l.bf16 %v2973_v50 }
 0x1ad   : > { %2096 = vrot.lane.b32.xlu1 %v2095_v46, %s2252_s1 }
 0x1b0   : > { %v2978_v31 = vpop.permute.xlu2 %1946 }
 0x1b1   : > { %v1948_v54 = vunpack.i.l.bf16 %v2978_v31 }
 0x1b8   : > { %v2982_v38 = vpop.permute.xlu2 %1961 }
 0x1bf   : > { %v2985_v16 = vpop.permute.xlu1 %1926  ;;  %v2987_v47 = vpop.permute.xlu0 %1936 }
 0x1c0   : > { %v1928_v36 = vunpack.i.l.bf16 %v2985_v16  ;;  %v2990_v2 = vpop.permute.xlu2 %1976  ;;  %v1938_v53 = vunpack.i.l.bf16 %v2987_v47 }
 0x1c2   : > { %v828_v35 = vsel %vm827_vm10, %v826_v48, %v1928_v36 }
 0x1c3   : > { %v830_v34 = vsel %vm829_vm11, %v828_v35, %v1933_v30 }
 0x1c4   : > { %v832_v15 = vsel %vm831_vm12, %v830_v34, %v1938_v53  ;;  %v1964_v34 = vunpack.i.h.bf16 %v2982_v38 }
 0x1c7   : > { %v2999_v42 = vpop.permute.xlu1 %1941  ;;  %v3001_v14 = vpop.permute.xlu0 %1951 }
 0x1c8   : > { %v1943_v23 = vunpack.i.l.bf16 %v2999_v42  ;;  %v3004_v13 = vpop.permute.xlu2 %1991  ;;  %v1953_v59 = vunpack.i.l.bf16 %v3001_v14 }
 0x1ca   : > { %v834_v61 = vsel %vm833_vm13, %v832_v15, %v1943_v23  ;;  %v1979_v15 = vunpack.i.h.bf16 %v2990_v2  ;;  %v1994_v23 = vunpack.i.h.bf16 %v3004_v13 }
 0x1cb   : > { %v836_v40 = vsel %vm835_vm14, %v834_v61, %v1948_v54  ;;  %v1993_v61 = vunpack.i.l.bf16 %v3004_v13 }
 0x1cc   : > { %v838_v55 = vsel %vm837_vm15, %v836_v40, %v1953_v59 }
 0x1cf   : > { %v3011_v8 = vpop.permute.xlu1 %1956  ;;  %v3013_v10 = vpop.permute.xlu0 %1971 }
 0x1d0   : > { %v3015_v25 = vpop.permute.xlu2 %2016  ;;  %v1958_v39 = vunpack.i.l.bf16 %v3011_v8  ;;  %v1974_v24 = vunpack.i.h.bf16 %v3013_v10 }
 0x1d1   : > { %v2019_v37 = vunpack.i.h.bf16 %v3015_v25  ;;  %v2018_v49 = vunpack.i.l.bf16 %v3015_v25 }
 0x1d2   : > { %v3027_v58 = vsel %vm839_vm1, %v838_v55, %v1958_v39 }
 0x1d7   : > { %v3017_v60 = vpop.permute.xlu1 %1966  ;;  %v3019_v22 = vpop.permute.xlu0 %1986 }
 0x1d8   : > { %v2042_v27 = vpop.permute.xlu2 %2041  ;;  %v1969_v39 = vunpack.i.h.bf16 %v3017_v60 }
 0x1d9   : > { %v2044_v54 = vunpack.i.h.bf16 %v2042_v27  ;;  %v2043_v59 = vunpack.i.l.bf16 %v2042_v27 }
 0x1db   : > { %v1551_v25 = vsel %vm814_vm4, %v2044_v54, %v2852_v33 }
 0x1df   : > { %v3021_v62 = vpop.permute.xlu1 %1981  ;;  %v2002_v11 = vpop.permute.xlu0 %2001 }
 0x1e0   : > { %v3024_v41 = vpop.permute.xlu2 %2056  ;;  %v2004_v9 = vunpack.i.h.bf16 %v2002_v11  ;;  %v2003_v36 = vunpack.i.l.bf16 %v2002_v11 }
 0x1e2   : > { %v1036_v29 = vsel %vm269_vm0, %v1035_v0, %v2004_v9 }
 0x1e7   : > { %v3029_v12 = vpop.permute.xlu1 %1996  ;;  %v2012_v56 = vpop.permute.xlu0 %2011 }
 0x1e8   : > { %v3031_v3 = vpop.permute.xlu2 %2066  ;;  %v2014_v21 = vunpack.i.h.bf16 %v2012_v56  ;;  %v2013_v30 = vunpack.i.l.bf16 %v2012_v56  ;;  %v1461_v56 = vsel %vm814_vm4, %v2910_v57, %v2003_v36  ;;  %v1514_v57 = vsel %vm814_vm4, %v2043_v59, %v2939_v51 }
 0x1e9   : > { %v1984_v51 = vunpack.i.h.bf16 %v3021_v62  ;;  %v2059_v36 = vunpack.i.h.bf16 %v3024_v41 }
 0x1ea   : > { %v1037_v5 = vsel %vm817_vm5, %v1036_v29, %v2014_v21  ;;  %v1983_v21 = vunpack.i.l.bf16 %v3021_v62  ;;  %v1462_v0 = vsel %vm269_vm0, %v1461_v56, %v2013_v30  ;;  %v2058_v30 = vunpack.i.l.bf16 %v3024_v41 }
 0x1eb   : > { %v1038_v26 = vsel %vm819_vm6, %v1037_v5, %v2019_v37  ;;  %v1989_v5 = vunpack.i.h.bf16 %v3019_v22  ;;  %v1988_v37 = vunpack.i.l.bf16 %v3019_v22 }
 0x1ef   : > { %v3033_v43 = vpop.permute.xlu1 %2006  ;;  %v3035_v19 = vpop.permute.xlu0 %2026 }
 0x1f0   : > { %v3042_v20 = vpop.permute.xlu2 %2081  ;;  %v2029_v28 = vunpack.i.h.bf16 %v3035_v19 }
 0x1f1   : > { %v2084_v32 = vunpack.i.h.bf16 %v3042_v20 }
 0x1f7   : > { %v2022_v7 = vpop.permute.xlu1 %2021  ;;  %v2032_v63 = vpop.permute.xlu0 %2031 }
 0x1f8   : > { %v2024_v4 = vunpack.i.h.bf16 %v2022_v7  ;;  %v2033_v35 = vunpack.i.l.bf16 %v2032_v63  ;;  %v2023_v29 = vunpack.i.l.bf16 %v2022_v7  ;;  %v2034_v45 = vunpack.i.h.bf16 %v2032_v63 }
 0x1f9   : > { %v2008_v7 = vunpack.i.l.bf16 %v3033_v43  ;;  %v2028_v63 = vunpack.i.l.bf16 %v3035_v19  ;;  %v1576_v19 = vld [vmem:[%s3217_s3] sm:$0xf] }
 0x1fa   : > { %v1039_v17 = vsel %vm821_vm7, %v1038_v26, %v2024_v4  ;;  %v999_v27 = vsel %vm269_vm0, %v998_v52, %v2033_v35  ;;  %v1998_v4 = vunpack.i.l.bf16 %v3029_v12  ;;  %v1463_v26 = vsel %vm817_vm5, %v1462_v0, %v2018_v49 }
 0x1fb   : > { %v1040_v46 = vsel %vm823_vm8, %v1039_v17, %v2029_v28  ;;  %v1464_v17 = vsel %vm819_vm6, %v1463_v26, %v2023_v29  ;;  %v2083_v35 = vunpack.i.l.bf16 %v3042_v20  ;;  %v2267_v29 = vmov 0  }
 0x1fc   : > { %v1041_v48 = vsel %vm825_vm9, %v1040_v46, %v2084_v32  ;;  %2100 = vset.pattern.permute.xlu0 %v2267_v29  ;;  %v2068_v26 = vunpack.i.l.bf16 %v3031_v3 }
 0x1fd   : > { %v1561_v53 = vrot.slane %v1041_v48, 4  ;;  %1579 = vperm.xlu0 %2100, %v1576_v19  }
 0x1ff   : > { %v2037_v40 = vpop.permute.xlu1 %2036  ;;  %v2047_v55 = vpop.permute.xlu0 %2046  ;;  %v3063_v11 = vsel %vm1570_vm2, %v951_v18, %v1561_v53  ;;  %v1515_v18 = vsel %vm269_vm0, %v1514_v57, %v2034_v45 }
 0x200   : > { %v2038_v9 = vunpack.i.l.bf16 %v2037_v40  ;;  %v2039_v32 = vunpack.i.h.bf16 %v2037_v40  ;;  %v2049_v46 = vunpack.i.h.bf16 %v2047_v55  ;;  %v2048_v52 = vunpack.i.l.bf16 %v2047_v55 }
 0x201   : > { %v1465_v55 = vsel %vm821_vm7, %v1464_v17, %v2028_v63  ;;  %v1929_v63 = vunpack.i.h.bf16 %v2985_v16  ;;  %v1973_v16 = vunpack.i.l.bf16 %v3013_v10 }
 0x202   : > { %v1000_v44 = vsel %vm817_vm5, %v999_v27, %v2038_v9  ;;  %v1516_v59 = vsel %vm817_vm5, %v1515_v18, %v2039_v32  ;;  %v1344_v41 = vsel %vm814_vm4, %v2900_v6, %v2048_v52  ;;  %v1552_v20 = vsel %vm269_vm0, %v1551_v25, %v2049_v46 }
 0x203   : > { %v1001_v28 = vsel %vm819_vm6, %v1000_v44, %v1983_v21  ;;  %v1999_v27 = vunpack.i.h.bf16 %v3029_v12  ;;  %v1517_v12 = vsel %vm819_vm6, %v1516_v59, %v2058_v30  ;;  %v1575_v30 = vld [vmem:[%s3216_s2] sm:$0xf]  ;;  %v1968_v18 = vunpack.i.l.bf16 %v3017_v60 }
 0x204   : > { %v1002_v22 = vsel %vm821_vm7, %v1001_v28, %v1988_v37  ;;  %vm1630_vm4 = vcmask 523268  }
 0x205   : > { %v1003_v33 = vsel %vm823_vm8, %v1002_v22, %v1993_v61 }
 0x206   : > { %v1004_v48 = vsel %vm825_vm9, %v1003_v33, %v1998_v4  ;;  %v2009_v4 = vunpack.i.h.bf16 %v3033_v43 }
 0x207   : > { %v2052_v53 = vpop.permute.xlu1 %2051  ;;  %v2062_v54 = vpop.permute.xlu0 %2061  ;;  %v1005_v61 = vsel %vm827_vm10, %v1004_v48, %v2008_v7 }
 0x208   : > { %v2054_v40 = vunpack.i.h.bf16 %v2052_v53  ;;  %v2053_v62 = vunpack.i.l.bf16 %v2052_v53  ;;  %v1006_v49 = vsel %vm829_vm11, %v1005_v61, %v1964_v34  ;;  %v2063_v21 = vunpack.i.l.bf16 %v2062_v54 }
 0x209   : > { %v1007_v0 = vsel %vm831_vm12, %v1006_v49, %v1969_v39  ;;  %v2064_v25 = vunpack.i.h.bf16 %v2062_v54  ;;  %v1466_v34 = vsel %vm823_vm8, %v1465_v55, %v2083_v35  ;;  %v1934_v35 = vunpack.i.h.bf16 %v2973_v50 }
 0x20a   : > { %v1345_v56 = vsel %vm269_vm0, %v1344_v41, %v2053_v62  ;;  %v1553_v9 = vsel %vm817_vm5, %v1552_v20, %v2054_v40  ;;  %v1008_v6 = vsel %vm833_vm13, %v1007_v0, %v1974_v24  ;;  %v1518_v28 = vsel %vm821_vm7, %v1517_v12, %v2063_v21 }
 0x20b   : > { %v1554_v37 = vsel %vm819_vm6, %v1553_v9, %v1984_v51  ;;  %v1346_v44 = vsel %vm817_vm5, %v1345_v56, %v2059_v36  ;;  %v1009_v39 = vsel %vm835_vm14, %v1008_v6, %v1979_v15  ;;  %v1467_v43 = vsel %vm825_vm9, %v1466_v34, %v2009_v4 }
 0x20c   : > { %v1555_v57 = vsel %vm821_vm7, %v1554_v37, %v1989_v5  ;;  %v1347_v24 = vsel %vm819_vm6, %v1346_v44, %v2064_v25  ;;  %v2069_v5 = vunpack.i.h.bf16 %v3031_v3  ;;  %v1519_v52 = vsel %vm823_vm8, %v1518_v28, %v2068_v26 }
 0x20d   : > { %v1556_v45 = vsel %vm823_vm8, %v1555_v57, %v1994_v23  ;;  %v1963_v36 = vunpack.i.l.bf16 %v2982_v38  ;;  %v1939_v38 = vunpack.i.h.bf16 %v2987_v47  ;;  %v1978_v40 = vunpack.i.l.bf16 %v2990_v2  ;;  %v1342_v57 = vpop.permute.xlu2 %1341 }
 0x20e   : > { %v1557_v7 = vsel %vm825_vm9, %v1556_v45, %v1999_v27  ;;  %v1348_v23 = vsel %vm821_vm7, %v1347_v24, %v2069_v5  ;;  %v1944_v50 = vunpack.i.h.bf16 %v2999_v42  ;;  %v1949_v55 = vunpack.i.h.bf16 %v2978_v31 }
 0x20f   : > { %v2072_v32 = vpop.permute.xlu1 %2071  ;;  %v2087_v15 = vpop.permute.xlu0 %2086  ;;  %v1567_v22 = vrot.slane %v1557_v7, 4  ;;  %v1954_v2 = vunpack.i.h.bf16 %v3001_v14  ;;  %v1959_v42 = vunpack.i.h.bf16 %v3011_v8  ;;  %v1923_v34 = vunpack.i.l.bf16 %v2963_v1 }
 0x210   : > { %v2074_v17 = vunpack.i.h.bf16 %v2072_v32  ;;  %v2073_v33 = vunpack.i.l.bf16 %v2072_v32  ;;  %v2089_v13 = vunpack.i.h.bf16 %v2087_v15  ;;  %v2088_v46 = vunpack.i.l.bf16 %v2087_v15 }
 0x211   : > { %v1574_v51 = vsel %vm1570_vm2, %v1467_v43, %v1567_v22  ;;  %v842_v7 = vsel %vm841_vm3, %v3027_v58, %v1923_v34 }
 0x212   : > { %v1349_v3 = vsel %vm823_vm8, %v1348_v23, %v2074_v17  ;;  %v1520_v48 = vsel %vm825_vm9, %v1519_v52, %v2073_v33  ;;  %1619 = vmatpush.msrb.mxu3 %v1574_v51 }
 0x213   : > { %v1350_v53 = vsel %vm825_vm9, %v1349_v3, %v2089_v13  ;;  %v1521_v54 = vsel %vm827_vm10, %v1520_v48, %v2088_v46 }
 0x214   : > { %v1351_v61 = vsel %vm827_vm10, %v1350_v53, %v1963_v36  ;;  %v1522_v59 = vsel %vm829_vm11, %v1521_v54, %v1929_v63  ;;  %1620 = vmatpush.msrb.mxu3 %v3063_v11 }
 0x215   : > { %v1352_v60 = vsel %vm829_vm11, %v1351_v61, %v1968_v18  ;;  %v1523_v62 = vsel %vm831_vm12, %v1522_v59, %v1934_v35  ;;  %1780 = vmatmul.msk.f32.vlgmr.msrb.gmra.mxu3 %vm269_vm0, %v1575_v30 }
 0x216   : > { %v1524_v47 = vsel %vm833_vm13, %v1523_v62, %v1939_v38  ;;  %v1353_v10 = vsel %vm831_vm12, %v1352_v60, %v1973_v16 }
 0x217   : > { %v2077_v19 = vpop.permute.xlu1 %2076  ;;  %v1354_v41 = vsel %vm833_vm13, %v1353_v10, %v1978_v40  ;;  %v1525_v11 = vsel %vm835_vm14, %v1524_v47, %v1944_v50  ;;  %v2092_v9 = vpop.permute.xlu0 %2091 }
 0x218   : > { %v1526_v20 = vsel %vm837_vm15, %v1525_v11, %v1949_v55  ;;  %v2079_v49 = vunpack.i.h.bf16 %v2077_v19  ;;  %v2078_v56 = vunpack.i.l.bf16 %v2077_v19  ;;  %v2094_v31 = vunpack.i.h.bf16 %v2092_v9 }
 0x219   : > { %v1527_v21 = vsel %vm839_vm1, %v1526_v20, %v1954_v2  ;;  %v2093_v29 = vunpack.i.l.bf16 %v2092_v9 }
 0x21a   : > { %v1528_v0 = vsel %vm841_vm3, %v1527_v21, %v1959_v42  ;;  %v1010_v27 = vsel %vm837_vm15, %v1009_v39, %v2079_v49  ;;  %v1355_v37 = vsel %vm835_vm14, %v1354_v41, %v2078_v56 }
 0x21b   : > { %v1011_v8 = vsel %vm839_vm1, %v1010_v27, %v2094_v31  ;;  %v1356_v25 = vsel %vm837_vm15, %v1355_v37, %v2093_v29  ;;  %v1566_v45 = vrot.slane %v1528_v0, 4 }
 0x21f   : > { %v2097_v44 = vpop.permute.xlu1 %2096 }
 0x220   : > { %v2099_v14 = vunpack.i.h.bf16 %v2097_v44  ;;  %v2098_v6 = vunpack.i.l.bf16 %v2097_v44 }
 0x222   : > { %v1012_v4 = vsel %vm841_vm3, %v1011_v8, %v2099_v14  ;;  %v1357_v12 = vsel %vm839_vm1, %v1356_v25, %v2098_v6 }
 0x223   : > { %v1358_v39 = vsel %vm841_vm3, %v1357_v12, %v1342_v57  ;;  %v1560_v24 = vrot.slane %v1012_v4, 4 }
 0x224   : > { %v1573_v28 = vsel %vm1570_vm2, %v1358_v39, %v1566_v45 }
 0x225   : > { %1599 = vmatpush.msrb.mxu2 %v1573_v28  ;;  %v1571_v5 = vsel %vm1570_vm2, %v842_v7, %v1560_v24 }
 0x227   : > { %1600 = vmatpush.msrb.mxu2 %v1571_v5 }
 0x228   : > { %1779 = vmatmul.msk.f32.vlgmr.msrb.gmra.mxu2 %vm269_vm0, %v1575_v30  ;;  %vm1631_vm0 = vmor %vm1630_vm4, %vm1570_vm2 }
 0x26f   : > { %v1580_v1 = vpop.permute.xlu0 %1579 }
 0x298   : > { %v1622_v26 = vpop.f32.mrf.mxu3 }
 0x299   : > { %v1623_v32 = vadd.f32 %v1622_v26, %v1580_v1 }
 0x29b   : > { %v1627_v15 = vrot.slane %v1623_v32, 4 }
 0x2ab   : > { %v1602_v58 = vpop.f32.mrf.mxu2 }
 0x2ac   : > { %v1603_v43 = vadd.f32 %v1602_v58, %v1580_v1 }
 0x2ae   : > { %v1628_v22 = vsel %vm1570_vm2, %v1603_v43, %v1627_v15 }
 0x2af   : > { %1632 = vst.msk [vmem:[%s252_s28] sm:$0xff] %vm1631_vm0, %v1628_v22 }
 0x2b0   : > { %2188 = shalt.err (!%p2185_p0)
}
 0x2b1   : > { %1800 = dma.vmem_to_hbm [thread:$0]  (%p2371_p5), %s1650_s29, 128, %s1652_s5, %s1634_s18  }
 0x2b2 PF: > { %s1663_s10 = sand.u32 1, %s2227_s15   ;;  %p1811_p3 = pnand %p1750_p11, %p2342_p6 }
 0x2b3   : > { %s1664_s25 = scalar_lea.sflag [#allocation5], %s1663_s10 }
 0x2b4   : > { %p1812_p7 = pneg %p1811_p3 }
 0x2b6   : > { %2222 = dma.done.wait (%p1812_p7), %s1664_s25, 128  }
 0x2b7   : > { %2224 = vsyncadd (%p1812_p7), %s1664_s25, 4294967168  ;;  %s21_s20 = sadd.s32 1, %s2247_s20   ;;  %s3229_s15 = smov %s2231_s16 }
 0x2b8   : > { %p18_p9 = scmp.ge.s32.totalorder %s21_s20, 4   ;;  %s3230_s16 = smov %s2235_s17 }
 0x2b9   : > { %s3231_s17 = smov %s2380_s21  ;;  %s3232_s18 = smov %s2243_s19 }
 0x2ba   : > { %s3233_s19 = smov %s3235_s9  ;;  %20 = sbr.rel (!%p18_p9) target bundleno = 9 (0x9), region = 86 }
 0x2bf   :  { %1670 = vsyncpa [#allocation4], 1 }
 0x2c0   :  { %1672 = vsyncpa [#allocation4 + $0x1], 1 }
 0x2c1   :  { %1673 = vsyncpa [#allocation7], 1 }
 0x2c2   :  { %1674 = vsyncpa [#allocation5], 1 }
 0x2c3   :  { %1676 = vsyncpa [#allocation5 + $0x1], 1 }

</bundles_post_ra>
